<compile_context>
chip_gen: v7x
topology: tpu7x:2x2x1
jax: 0.10.0
libtpu: 0.0.40
codegen_flags: <defaults>
</compile_context>

<pallas_src>
import jax
import jax.numpy as jnp
from jax.experimental import pallas as pl
from jax.experimental.pallas import tpu as pltpu


# ----------------------------------------------------------------------------
# Kernel 1: PointNet encoder (1x1 convs + ReLU + global max-pool), tiled over N.
# ----------------------------------------------------------------------------
def encoder_kernel(x_ref, w1_ref, b1_ref, w2_ref, b2_ref, w3_ref, b3_ref,
                   z_ref, maxacc_ref):
    @pl.when(pl.program_id(0) == 0)
    def _():
        maxacc_ref[...] = jnp.full(maxacc_ref.shape, -jnp.inf, jnp.float32)

    w1 = w1_ref[...]                                     # (Cin, 64)
    batch, _, cin = x_ref.shape
    for b in range(batch):                               # batch is tiny & static
        xb = x_ref[b]                                    # (tn, Cin)
        # Layer 1: K = Cin (=3) is a degenerate MXU shape -> do Cin broadcast
        # FMAs on the VPU instead.
        h = xb[:, 0:1] * w1[0:1, :]
        for c in range(1, cin):
            h = h + xb[:, c:c + 1] * w1[c:c + 1, :]
        h = jnp.maximum(h + b1_ref[...], 0.0)            # (tn, 64)
        h = jnp.dot(h, w2_ref[...], preferred_element_type=jnp.float32)
        h = jnp.maximum(h + b2_ref[...], 0.0)            # (tn, 128)
        h = jnp.dot(h, w3_ref[...], preferred_element_type=jnp.float32)
        h = h + b3_ref[...]                              # (tn, L)
        hmax = jnp.max(h, axis=0, keepdims=True)         # (1, L)
        maxacc_ref[b:b + 1, :] = jnp.maximum(maxacc_ref[b:b + 1, :], hmax)

    @pl.when(pl.program_id(0) == pl.num_programs(0) - 1)
    def _():
        z_ref[...] = maxacc_ref[...]


# ----------------------------------------------------------------------------
# Kernel 2: DPF block (MLP trunk fused with the softmax-expectation head).
# Per grid step: one tile of point-coordinate rows of the big output Linear.
# The tiny trunk is recomputed every step (hidden under the w3 DMA).
# ----------------------------------------------------------------------------
def dpf_head_kernel(z_ref, w1_ref, b1_ref, w2_ref, b2_ref,
                    w3_ref, b3_ref, bins_ref, out_ref):
    h1 = jnp.dot(z_ref[...], w1_ref[...], preferred_element_type=jnp.float32)
    h1 = jnp.maximum(h1 + b1_ref[...], 0.0)              # (B, 512)
    h2 = jnp.dot(h1, w2_ref[...], preferred_element_type=jnp.float32)
    h2 = jnp.maximum(h2 + b2_ref[...], 0.0)              # (B, 1024)
    h2 = h2.astype(w3_ref.dtype)                         # bf16 MXU operand

    # logits[r, b] = sum_k w3[r, k] * h2[b, k]   (torch Linear row ordering)
    logits = jax.lax.dot_general(
        w3_ref[...], h2, (((1,), (1,)), ((), ())),
        preferred_element_type=jnp.float32)               # (R, B)
    logits = logits + b3_ref[...]                          # (R, 1) broadcast

    tile_rows, batch = out_ref.shape
    nb = bins_ref.shape[0]
    lg = logits.reshape(tile_rows, nb, batch)              # layout-trivial split
    m = jnp.max(lg, axis=1, keepdims=True)                 # (rows, 1, B)
    e = jnp.exp(lg - m)
    den = jnp.sum(e, axis=1)                               # (rows, B)
    num = jnp.sum(e * bins_ref[...][None, :, :], axis=1)   # (rows, B)
    out_ref[...] = num / den


# ----------------------------------------------------------------------------
# Tile-size helpers
# ----------------------------------------------------------------------------
def _pick_encoder_tile(N):
    for t in (1024, 512, 256, 128):
        if N >= t and N % t == 0:
            return t
    return N


def _pick_head_tile(P3):
    # 128 point-coord rows -> bf16 w3 tile of 128*64*1024*2 B = 16 MiB; its
    # double buffer fits comfortably even in v7x's 64 MiB physical VMEM.
    if P3 % 128 == 0:
        return 128
    return P3


# ----------------------------------------------------------------------------
# Wrappers
# ----------------------------------------------------------------------------
def encode(x_ncw, enc):
    x = jnp.transpose(x_ncw, (0, 2, 1))                  # (B, N, Cin)
    B, N, Cin = x.shape
    L = enc["w3"].shape[1]
    tile_n = _pick_encoder_tile(N)
    n_tiles = N // tile_n

    return pl.pallas_call(
        encoder_kernel,
        out_shape=jax.ShapeDtypeStruct((B, L), jnp.float32),
        grid=(n_tiles,),
        in_specs=[
            pl.BlockSpec((B, tile_n, Cin), lambda i: (0, i, 0)),
            pl.BlockSpec(enc["w1"].shape, lambda i: (0, 0)),
            pl.BlockSpec(enc["b1"].shape, lambda i: (0, 0)),
            pl.BlockSpec(enc["w2"].shape, lambda i: (0, 0)),
            pl.BlockSpec(enc["b2"].shape, lambda i: (0, 0)),
            pl.BlockSpec(enc["w3"].shape, lambda i: (0, 0)),
            pl.BlockSpec(enc["b3"].shape, lambda i: (0, 0)),
        ],
        out_specs=pl.BlockSpec((B, L), lambda i: (0, 0)),
        scratch_shapes=[pltpu.VMEM((B, L), jnp.float32)],
        compiler_params=pltpu.CompilerParams(
            dimension_semantics=("arbitrary",)),
    )(x, enc["w1"], enc["b1"], enc["w2"], enc["b2"], enc["w3"], enc["b3"])


def decode_block(z, blk, num_points, num_bins):
    B, latent = z.shape
    K = blk["w2"].shape[1]                               # 1024
    P3 = num_points * 3
    tile_rows = _pick_head_tile(P3)
    n_tiles = P3 // tile_rows
    tile_R = tile_rows * num_bins                        # rows of w3 per step

    bins = jnp.linspace(-1.0, 1.0, num_bins,
                        dtype=jnp.float32).reshape(num_bins, 1)

    w3_tile_bytes = tile_R * K * blk["w3"].dtype.itemsize
    vmem_limit = int(min(2 * w3_tile_bytes + (16 << 20), 48 << 20))

    out = pl.pallas_call(
        dpf_head_kernel,
        out_shape=jax.ShapeDtypeStruct((P3, B), jnp.float32),
        grid=(n_tiles,),
        in_specs=[
            pl.BlockSpec((B, latent), lambda i: (0, 0)),
            pl.BlockSpec(blk["w1"].shape, lambda i: (0, 0)),
            pl.BlockSpec(blk["b1"].shape, lambda i: (0, 0)),
            pl.BlockSpec(blk["w2"].shape, lambda i: (0, 0)),
            pl.BlockSpec(blk["b2"].shape, lambda i: (0, 0)),
            pl.BlockSpec((tile_R, K), lambda i: (i, 0)),
            pl.BlockSpec((tile_R, 1), lambda i: (i, 0)),
            pl.BlockSpec((num_bins, 1), lambda i: (0, 0)),
        ],
        out_specs=pl.BlockSpec((tile_rows, B), lambda i: (i, 0)),
        compiler_params=pltpu.CompilerParams(
            dimension_semantics=("parallel",),
            vmem_limit_bytes=vmem_limit,
        ),
    )(z, blk["w1"], blk["b1"], blk["w2"], blk["b2"],
      blk["w3"], blk["b3"], bins)

    # Tiny transpose in the wrapper (P*3 x B floats) -> (B, P, 3).
    return jnp.transpose(out).reshape(B, num_points, 3)


def forward(x_ncw, params, num_points, num_bins):
    z = encode(x_ncw, params["encoder"])
    # StackedDPFDecoder overwrites x every flow and returns only the last
    # flow's output -> decoding only the last block preserves semantics.
    return decode_block(z, params["decoder"][-1], num_points, num_bins)


# ----------------------------------------------------------------------------
# Pure-JAX reference (for the correctness check only)
# ----------------------------------------------------------------------------
def forward_ref(x_ncw, params, num_points, num_bins):
    enc = params["encoder"]
    x = jnp.transpose(x_ncw, (0, 2, 1))
    h = jnp.maximum(jnp.einsum("bnc,cd->bnd", x, enc["w1"]) + enc["b1"], 0.0)
    h = jnp.maximum(jnp.einsum("bnc,cd->bnd", h, enc["w2"]) + enc["b2"], 0.0)
    h = jnp.einsum("bnc,cd->bnd", h, enc["w3"]) + enc["b3"]
    z = jnp.max(h, axis=1)
    B = z.shape[0]

    blk = params["decoder"][-1]        # earlier flows are discarded in torch too
    h1 = jnp.maximum(z @ blk["w1"] + blk["b1"], 0.0)
    h2 = jnp.maximum(h1 @ blk["w2"] + blk["b2"], 0.0).astype(blk["w3"].dtype)
    logits = jnp.einsum("bk,rk->br", h2, blk["w3"],
                        preferred_element_type=jnp.float32)
    logits = logits + blk["b3"][:, 0][None, :]
    logits = logits.reshape(B, num_points, 3, num_bins)
    probs = jax.nn.softmax(logits, axis=-1)
    bins = jnp.linspace(-1.0, 1.0, num_bins, dtype=jnp.float32)
    coords = jnp.sum(probs * bins[None, None, None, :], axis=-1)
    return coords


# ----------------------------------------------------------------------------
# Deterministic parameter init (synthetic, fan-in scaled)
# ----------------------------------------------------------------------------
def _dense(key, fan_in, shape):
    return jax.random.normal(key, shape, jnp.float32) / jnp.sqrt(float(fan_in))


def init_params(key, input_dim, latent_dim, num_points, num_bins, num_flows):
    P3 = num_points * 3
    keys = jax.random.split(key, 6 + 6 * num_flows)
    ki = iter(range(len(keys)))
    enc = {
        "w1": _dense(keys[next(ki)], input_dim, (input_dim, 64)),
        "b1": _dense(keys[next(ki)], 64, (1, 64)),
        "w2": _dense(keys[next(ki)], 64, (64, 128)),
        "b2": _dense(keys[next(ki)], 128, (1, 128)),
        "w3": _dense(keys[next(ki)], 128, (128, latent_dim)),
        "b3": _dense(keys[next(ki)], latent_dim, (1, latent_dim)),
    }
    dec = []
    for _ in range(num_flows):
        dec.append({
            "w1": _dense(keys[next(ki)], latent_dim, (latent_dim, 512)),
            "b1": _dense(keys[next(ki)], 512, (1, 512)),
            "w2": _dense(keys[next(ki)], 512, (512, 1024)),
            "b2": _dense(keys[next(ki)], 1024, (1, 1024)),
            # Linear(1024 -> P*3*num_bins): weight kept in torch layout
            # (out_features, in_features), stored bf16 (head is HBM-bound).
            "w3": _dense(keys[next(ki)], 1024,
                         (P3 * num_bins, 1024)).astype(jnp.bfloat16),
            "b3": _dense(keys[next(ki)], 1024, (P3 * num_bins, 1)),
        })
    return {"encoder": enc, "decoder": dec}


# TODO(synk): chamfer_distance / compute_loss (torch.cdist) are not part of
# forward(); not implemented as Pallas kernels here.

if __name__ == "__main__":
    B, input_dim, N = 2, 3, 128
    latent_dim, num_points, num_bins, num_flows = 64, 16, 64, 2

    key = jax.random.PRNGKey(0)
    k_in, k_par = jax.random.split(key)
    x = jax.random.normal(k_in, (B, input_dim, N), jnp.float32)  # torch (B, 3, N)
    params = init_params(k_par, input_dim, latent_dim,
                         num_points, num_bins, num_flows)

    out = jax.block_until_ready(forward(x, params, num_points, num_bins))
    ref = jax.block_until_ready(forward_ref(x, params, num_points, num_bins))

    assert out.shape == (B, num_points, 3), out.shape
    max_err = float(jnp.max(jnp.abs(out - ref)))
    assert max_err < 2e-3, f"max abs err {max_err}"
    print("KERNEL_OK")
</pallas_src>

<mosaic_0001>
module attributes {stable_mosaic.version = 11 : i64} {
  func.func @encoder_kernel(%arg0: i32, %arg1: memref<2x128x3xf32, #tpu.memory_space<vmem>>, %arg2: memref<3x64xf32, #tpu.memory_space<vmem>>, %arg3: memref<1x64xf32, #tpu.memory_space<vmem>>, %arg4: memref<64x128xf32, #tpu.memory_space<vmem>>, %arg5: memref<1x128xf32, #tpu.memory_space<vmem>>, %arg6: memref<128x64xf32, #tpu.memory_space<vmem>>, %arg7: memref<1x64xf32, #tpu.memory_space<vmem>>, %arg8: memref<2x64xf32, #tpu.memory_space<vmem>>, %arg9: memref<2x64xf32, #tpu.memory_space<vmem>>) attributes {dimension_semantics = [#tpu.dimension_semantics<arbitrary>], iteration_bounds = array<i64: 1>, scalar_prefetch = 0 : i64, scratch_operands = 1 : i64, tpu.core_type = #tpu.core_type<tc>, window_params = [{transform_indices = @transform_0, window_bounds = array<i64: 2, 128, 3>}, {pipeline_mode = #tpu.pipeline_mode<synchronous>, transform_indices = @transform_1, window_bounds = array<i64: 3, 64>}, {pipeline_mode = #tpu.pipeline_mode<synchronous>, transform_indices = @transform_2, window_bounds = array<i64: 1, 64>}, {pipeline_mode = #tpu.pipeline_mode<synchronous>, transform_indices = @transform_3, window_bounds = array<i64: 64, 128>}, {pipeline_mode = #tpu.pipeline_mode<synchronous>, transform_indices = @transform_4, window_bounds = array<i64: 1, 128>}, {pipeline_mode = #tpu.pipeline_mode<synchronous>, transform_indices = @transform_5, window_bounds = array<i64: 128, 64>}, {pipeline_mode = #tpu.pipeline_mode<synchronous>, transform_indices = @transform_6, window_bounds = array<i64: 1, 64>}, {pipeline_mode = #tpu.pipeline_mode<synchronous>, transform_indices = @transform_7, window_bounds = array<i64: 2, 64>}]} {
    %c0_i32 = arith.constant 0 : i32
    %0 = arith.cmpi eq, %arg0, %c0_i32 : i32
    %1 = arith.extui %0 : i1 to i32
    %c0_i32_0 = arith.constant 0 : i32
    %2 = arith.cmpi ne, %1, %c0_i32_0 : i32
    scf.if %2 {
      %cst_46 = arith.constant 0xFF800000 : f32
      %89 = vector.broadcast %cst_46 : f32 to vector<2x64xf32>
      %c0_47 = arith.constant 0 : index
      %c0_48 = arith.constant 0 : index
      %90 = vector.load %arg9[%c0_47, %c0_48] : memref<2x64xf32, #tpu.memory_space<vmem>>, vector<2x64xf32>
      tpu.vector_store %arg9[%c0_47, %c0_48], %89 {strides = array<i32>} : memref<2x64xf32, #tpu.memory_space<vmem>>, vector<2x64xf32>,
    } else {
    }
    %c0 = arith.constant 0 : index
    %c0_1 = arith.constant 0 : index
    %3 = vector.load %arg2[%c0, %c0_1] : memref<3x64xf32, #tpu.memory_space<vmem>>, vector<3x64xf32>
    %c0_2 = arith.constant 0 : index
    %c0_3 = arith.constant 0 : index
    %c0_4 = arith.constant 0 : index
    %4 = vector.load %arg1[%c0_2, %c0_3, %c0_4] : memref<2x128x3xf32, #tpu.memory_space<vmem>>, vector<1x128x3xf32>
    %5 = vector.shape_cast %4 : vector<1x128x3xf32> to vector<128x3xf32>
    %6 = vector.extract_strided_slice %5 {offsets = [0, 0], sizes = [128, 1], strides = [1, 1]} : vector<128x3xf32> to vector<128x1xf32>
    %7 = vector.extract_strided_slice %3 {offsets = [0, 0], sizes = [1, 64], strides = [1, 1]} : vector<3x64xf32> to vector<1x64xf32>
    %8 = vector.broadcast %6 : vector<128x1xf32> to vector<128x64xf32>
    %9 = vector.broadcast %7 : vector<1x64xf32> to vector<128x64xf32>
    %10 = arith.mulf %8, %9 : vector<128x64xf32>
    %11 = vector.extract_strided_slice %5 {offsets = [0, 1], sizes = [128, 1], strides = [1, 1]} : vector<128x3xf32> to vector<128x1xf32>
    %12 = vector.extract_strided_slice %3 {offsets = [1, 0], sizes = [1, 64], strides = [1, 1]} : vector<3x64xf32> to vector<1x64xf32>
    %13 = vector.broadcast %11 : vector<128x1xf32> to vector<128x64xf32>
    %14 = vector.broadcast %12 : vector<1x64xf32> to vector<128x64xf32>
    %15 = arith.mulf %13, %14 : vector<128x64xf32>
    %16 = arith.addf %10, %15 : vector<128x64xf32>
    %17 = vector.extract_strided_slice %5 {offsets = [0, 2], sizes = [128, 1], strides = [1, 1]} : vector<128x3xf32> to vector<128x1xf32>
    %18 = vector.extract_strided_slice %3 {offsets = [2, 0], sizes = [1, 64], strides = [1, 1]} : vector<3x64xf32> to vector<1x64xf32>
    %19 = vector.broadcast %17 : vector<128x1xf32> to vector<128x64xf32>
    %20 = vector.broadcast %18 : vector<1x64xf32> to vector<128x64xf32>
    %21 = arith.mulf %19, %20 : vector<128x64xf32>
    %22 = arith.addf %16, %21 : vector<128x64xf32>
    %c0_5 = arith.constant 0 : index
    %c0_6 = arith.constant 0 : index
    %23 = vector.load %arg3[%c0_5, %c0_6] : memref<1x64xf32, #tpu.memory_space<vmem>>, vector<1x64xf32>
    %24 = vector.broadcast %23 : vector<1x64xf32> to vector<128x64xf32>
    %25 = arith.addf %22, %24 : vector<128x64xf32>
    %cst = arith.constant 0.000000e+00 : f32
    %26 = vector.broadcast %cst : f32 to vector<128x64xf32>
    %27 = arith.maximumf %25, %26 : vector<128x64xf32>
    %c0_7 = arith.constant 0 : index
    %c0_8 = arith.constant 0 : index
    %28 = vector.load %arg4[%c0_7, %c0_8] : memref<64x128xf32, #tpu.memory_space<vmem>>, vector<64x128xf32>
    %cst_9 = arith.constant dense<0.000000e+00> : vector<128x128xf32>
    %29 = tpu.matmul %27, %28, %cst_9 {dimension_numbers = #tpu.dot_dimension_numbers<[1], [0], [0], [1], [0, 0, 1, 1], [], []>} : vector<128x64xf32>, vector<64x128xf32>, vector<128x128xf32> -> vector<128x128xf32>
    %c0_10 = arith.constant 0 : index
    %c0_11 = arith.constant 0 : index
    %30 = vector.load %arg5[%c0_10, %c0_11] : memref<1x128xf32, #tpu.memory_space<vmem>>, vector<1x128xf32>
    %31 = vector.broadcast %30 : vector<1x128xf32> to vector<128x128xf32>
    %32 = arith.addf %29, %31 : vector<128x128xf32>
    %cst_12 = arith.constant 0.000000e+00 : f32
    %33 = vector.broadcast %cst_12 : f32 to vector<128x128xf32>
    %34 = arith.maximumf %32, %33 : vector<128x128xf32>
    %c0_13 = arith.constant 0 : index
    %c0_14 = arith.constant 0 : index
    %35 = vector.load %arg6[%c0_13, %c0_14] : memref<128x64xf32, #tpu.memory_space<vmem>>, vector<128x64xf32>
    %cst_15 = arith.constant dense<0.000000e+00> : vector<128x64xf32>
    %36 = tpu.matmul %34, %35, %cst_15 {dimension_numbers = #tpu.dot_dimension_numbers<[1], [0], [0], [1], [0, 0, 1, 1], [], []>} : vector<128x128xf32>, vector<128x64xf32>, vector<128x64xf32> -> vector<128x64xf32>
    %c0_16 = arith.constant 0 : index
    %c0_17 = arith.constant 0 : index
    %37 = vector.load %arg7[%c0_16, %c0_17] : memref<1x64xf32, #tpu.memory_space<vmem>>, vector<1x64xf32>
    %38 = vector.broadcast %37 : vector<1x64xf32> to vector<128x64xf32>
    %39 = arith.addf %36, %38 : vector<128x64xf32>
    %cst_18 = arith.constant dense<0xFF800000> : vector<64xf32>
    %40 = vector.multi_reduction <maximumf>, %39, %cst_18 [0] : vector<128x64xf32> to vector<64xf32>
    %41 = vector.shape_cast %40 : vector<64xf32> to vector<1x64xf32>
    %c0_19 = arith.constant 0 : index
    %c0_20 = arith.constant 0 : index
    %42 = vector.load %arg9[%c0_19, %c0_20] : memref<2x64xf32, #tpu.memory_space<vmem>>, vector<1x64xf32>
    %43 = arith.maximumf %42, %41 : vector<1x64xf32>
    %c0_21 = arith.constant 0 : index
    %c0_22 = arith.constant 0 : index
    %44 = vector.load %arg9[%c0_21, %c0_22] : memref<2x64xf32, #tpu.memory_space<vmem>>, vector<1x64xf32>
    tpu.vector_store %arg9[%c0_21, %c0_22], %43 {strides = array<i32>} : memref<2x64xf32, #tpu.memory_space<vmem>>, vector<1x64xf32>,
    %c1 = arith.constant 1 : index
    %c0_23 = arith.constant 0 : index
    %c0_24 = arith.constant 0 : index
    %45 = vector.load %arg1[%c1, %c0_23, %c0_24] : memref<2x128x3xf32, #tpu.memory_space<vmem>>, vector<1x128x3xf32>
    %46 = vector.shape_cast %45 : vector<1x128x3xf32> to vector<128x3xf32>
    %47 = vector.extract_strided_slice %46 {offsets = [0, 0], sizes = [128, 1], strides = [1, 1]} : vector<128x3xf32> to vector<128x1xf32>
    %48 = vector.extract_strided_slice %3 {offsets = [0, 0], sizes = [1, 64], strides = [1, 1]} : vector<3x64xf32> to vector<1x64xf32>
    %49 = vector.broadcast %47 : vector<128x1xf32> to vector<128x64xf32>
    %50 = vector.broadcast %48 : vector<1x64xf32> to vector<128x64xf32>
    %51 = arith.mulf %49, %50 : vector<128x64xf32>
    %52 = vector.extract_strided_slice %46 {offsets = [0, 1], sizes = [128, 1], strides = [1, 1]} : vector<128x3xf32> to vector<128x1xf32>
    %53 = vector.extract_strided_slice %3 {offsets = [1, 0], sizes = [1, 64], strides = [1, 1]} : vector<3x64xf32> to vector<1x64xf32>
    %54 = vector.broadcast %52 : vector<128x1xf32> to vector<128x64xf32>
    %55 = vector.broadcast %53 : vector<1x64xf32> to vector<128x64xf32>
    %56 = arith.mulf %54, %55 : vector<128x64xf32>
    %57 = arith.addf %51, %56 : vector<128x64xf32>
    %58 = vector.extract_strided_slice %46 {offsets = [0, 2], sizes = [128, 1], strides = [1, 1]} : vector<128x3xf32> to vector<128x1xf32>
    %59 = vector.extract_strided_slice %3 {offsets = [2, 0], sizes = [1, 64], strides = [1, 1]} : vector<3x64xf32> to vector<1x64xf32>
    %60 = vector.broadcast %58 : vector<128x1xf32> to vector<128x64xf32>
    %61 = vector.broadcast %59 : vector<1x64xf32> to vector<128x64xf32>
    %62 = arith.mulf %60, %61 : vector<128x64xf32>
    %63 = arith.addf %57, %62 : vector<128x64xf32>
    %c0_25 = arith.constant 0 : index
    %c0_26 = arith.constant 0 : index
    %64 = vector.load %arg3[%c0_25, %c0_26] : memref<1x64xf32, #tpu.memory_space<vmem>>, vector<1x64xf32>
    %65 = vector.broadcast %64 : vector<1x64xf32> to vector<128x64xf32>
    %66 = arith.addf %63, %65 : vector<128x64xf32>
    %cst_27 = arith.constant 0.000000e+00 : f32
    %67 = vector.broadcast %cst_27 : f32 to vector<128x64xf32>
    %68 = arith.maximumf %66, %67 : vector<128x64xf32>
    %c0_28 = arith.constant 0 : index
    %c0_29 = arith.constant 0 : index
    %69 = vector.load %arg4[%c0_28, %c0_29] : memref<64x128xf32, #tpu.memory_space<vmem>>, vector<64x128xf32>
    %cst_30 = arith.constant dense<0.000000e+00> : vector<128x128xf32>
    %70 = tpu.matmul %68, %69, %cst_30 {dimension_numbers = #tpu.dot_dimension_numbers<[1], [0], [0], [1], [0, 0, 1, 1], [], []>} : vector<128x64xf32>, vector<64x128xf32>, vector<128x128xf32> -> vector<128x128xf32>
    %c0_31 = arith.constant 0 : index
    %c0_32 = arith.constant 0 : index
    %71 = vector.load %arg5[%c0_31, %c0_32] : memref<1x128xf32, #tpu.memory_space<vmem>>, vector<1x128xf32>
    %72 = vector.broadcast %71 : vector<1x128xf32> to vector<128x128xf32>
    %73 = arith.addf %70, %72 : vector<128x128xf32>
    %cst_33 = arith.constant 0.000000e+00 : f32
    %74 = vector.broadcast %cst_33 : f32 to vector<128x128xf32>
    %75 = arith.maximumf %73, %74 : vector<128x128xf32>
    %c0_34 = arith.constant 0 : index
    %c0_35 = arith.constant 0 : index
    %76 = vector.load %arg6[%c0_34, %c0_35] : memref<128x64xf32, #tpu.memory_space<vmem>>, vector<128x64xf32>
    %cst_36 = arith.constant dense<0.000000e+00> : vector<128x64xf32>
    %77 = tpu.matmul %75, %76, %cst_36 {dimension_numbers = #tpu.dot_dimension_numbers<[1], [0], [0], [1], [0, 0, 1, 1], [], []>} : vector<128x128xf32>, vector<128x64xf32>, vector<128x64xf32> -> vector<128x64xf32>
    %c0_37 = arith.constant 0 : index
    %c0_38 = arith.constant 0 : index
    %78 = vector.load %arg7[%c0_37, %c0_38] : memref<1x64xf32, #tpu.memory_space<vmem>>, vector<1x64xf32>
    %79 = vector.broadcast %78 : vector<1x64xf32> to vector<128x64xf32>
    %80 = arith.addf %77, %79 : vector<128x64xf32>
    %cst_39 = arith.constant dense<0xFF800000> : vector<64xf32>
    %81 = vector.multi_reduction <maximumf>, %80, %cst_39 [0] : vector<128x64xf32> to vector<64xf32>
    %82 = vector.shape_cast %81 : vector<64xf32> to vector<1x64xf32>
    %c1_40 = arith.constant 1 : index
    %c0_41 = arith.constant 0 : index
    %83 = vector.load %arg9[%c1_40, %c0_41] : memref<2x64xf32, #tpu.memory_space<vmem>>, vector<1x64xf32>
    %84 = arith.maximumf %83, %82 : vector<1x64xf32>
    %c1_42 = arith.constant 1 : index
    %c0_43 = arith.constant 0 : index
    %85 = vector.load %arg9[%c1_42, %c0_43] : memref<2x64xf32, #tpu.memory_space<vmem>>, vector<1x64xf32>
    tpu.vector_store %arg9[%c1_42, %c0_43], %84 {strides = array<i32>} : memref<2x64xf32, #tpu.memory_space<vmem>>, vector<1x64xf32>,
    %c0_i32_44 = arith.constant 0 : i32
    %86 = arith.cmpi eq, %arg0, %c0_i32_44 : i32
    %87 = arith.extui %86 : i1 to i32
    %c0_i32_45 = arith.constant 0 : i32
    %88 = arith.cmpi ne, %87, %c0_i32_45 : i32
    scf.if %88 {
      %c0_46 = arith.constant 0 : index
      %c0_47 = arith.constant 0 : index
      %89 = vector.load %arg9[%c0_46, %c0_47] : memref<2x64xf32, #tpu.memory_space<vmem>>, vector<2x64xf32>
      %c0_48 = arith.constant 0 : index
      %c0_49 = arith.constant 0 : index
      %90 = vector.load %arg8[%c0_48, %c0_49] : memref<2x64xf32, #tpu.memory_space<vmem>>, vector<2x64xf32>
      tpu.vector_store %arg8[%c0_48, %c0_49], %89 {strides = array<i32>} : memref<2x64xf32, #tpu.memory_space<vmem>>, vector<2x64xf32>,
    } else {
    }
    return
  }
  func.func @transform_0(%arg0: i32) -> (i32, i32, i32) {
    %c0_i32 = arith.constant 0 : i32
    %c0_i32_0 = arith.constant 0 : i32
    %c0_i32_1 = arith.constant 0 : i32
    return %c0_i32, %arg0, %c0_i32_0 : i32, i32, i32
  }
  func.func @transform_1(%arg0: i32) -> (i32, i32) {
    %c0_i32 = arith.constant 0 : i32
    %c0_i32_0 = arith.constant 0 : i32
    %c0_i32_1 = arith.constant 0 : i32
    return %c0_i32, %c0_i32_0 : i32, i32
  }
  func.func @transform_2(%arg0: i32) -> (i32, i32) {
    %c0_i32 = arith.constant 0 : i32
    %c0_i32_0 = arith.constant 0 : i32
    %c0_i32_1 = arith.constant 0 : i32
    return %c0_i32, %c0_i32_0 : i32, i32
  }
  func.func @transform_3(%arg0: i32) -> (i32, i32) {
    %c0_i32 = arith.constant 0 : i32
    %c0_i32_0 = arith.constant 0 : i32
    %c0_i32_1 = arith.constant 0 : i32
    return %c0_i32, %c0_i32_0 : i32, i32
  }
  func.func @transform_4(%arg0: i32) -> (i32, i32) {
    %c0_i32 = arith.constant 0 : i32
    %c0_i32_0 = arith.constant 0 : i32
    %c0_i32_1 = arith.constant 0 : i32
    return %c0_i32, %c0_i32_0 : i32, i32
  }
  func.func @transform_5(%arg0: i32) -> (i32, i32) {
    %c0_i32 = arith.constant 0 : i32
    %c0_i32_0 = arith.constant 0 : i32
    %c0_i32_1 = arith.constant 0 : i32
    return %c0_i32, %c0_i32_0 : i32, i32
  }
  func.func @transform_6(%arg0: i32) -> (i32, i32) {
    %c0_i32 = arith.constant 0 : i32
    %c0_i32_0 = arith.constant 0 : i32
    %c0_i32_1 = arith.constant 0 : i32
    return %c0_i32, %c0_i32_0 : i32, i32
  }
  func.func @transform_7(%arg0: i32) -> (i32, i32) {
    %c0_i32 = arith.constant 0 : i32
    %c0_i32_0 = arith.constant 0 : i32
    %c0_i32_1 = arith.constant 0 : i32
    return %c0_i32, %c0_i32_0 : i32, i32
  }
}

</mosaic_0001>

<bundles_post_ra>
// kernel: tpu_custom_call.1
= control target key start
LH: loop header
LB: loop body
LE: loop exit
PB: predicated region body
PF: predicated region fallthrough
CT: control target
= control target key end

     0   :  { %v2169_v2 = vmov 1   ;;  %v2170_v3 = vmov 0   ;;  %s2948_s0 = inlined_call_operand.vmem [shape: f32[2,128,3], index: 0, kind: input, shape index: {}]   ;;  %s2949_s1 = inlined_call_operand.vmem [shape: f32[3,64], index: 1, kind: input, shape index: {}]   ;;  %s2950_s2 = inlined_call_operand.vmem [shape: f32[1,64], index: 2, kind: input, shape index: {}]   ;;  %s2951_s3 = inlined_call_operand.vmem [shape: f32[64,128], index: 3, kind: input, shape index: {}]   ;;  %s2952_s4 = inlined_call_operand.vmem [shape: f32[1,128], index: 4, kind: input, shape index: {}]   ;;  %s2953_s5 = inlined_call_operand.vmem [shape: f32[128,64], index: 5, kind: input, shape index: {}]   ;;  %s2954_s6 = inlined_call_operand.vmem [shape: f32[1,64], index: 6, kind: input, shape index: {}]   ;;  %s2955_s7 = inlined_call_operand.hbm [shape: f32[2,64], index: 7, kind: output, shape index: {}]  }
   0x1   :  { %v2217_v0 = vld [vmem:[%s2948_s0 + $0x8] sm:$0xff]  ;;  %v34_v1 = vld [vmem:[%s2948_s0] sm:$0xff]  ;;  %2094 = vset.pattern.permute.xlu0 %v2169_v2  ;;  %2096 = vset.pattern.permute.xlu1 %v2170_v3  ;;  %v2231_v4 = vld [vmem:[%s2948_s0 + $0x18] sm:$0xff] }
   0x2   :  { %57 = vperm.xlu1 %2096, %v2217_v0   ;;  %151 = vperm.xlu0 %2094, %v34_v1  }
   0x6   :  { %2097 = vset.pattern.permute.xlu1 %v2169_v2  ;;  %2095 = vset.pattern.permute.xlu0 %v2170_v3 }
   0x7   :  { %155 = vperm.xlu1 %2097, %v2217_v0   ;;  %52 = vperm.xlu0 %2095, %v34_v1  }
   0x8   :  { %12 = vsyncpa [#allocation4], 0  ;;  %v2171_v5 = vmov 2   ;;  %v2238_v6 = vld [vmem:[%s2948_s0 + $0x28] sm:$0xff]  ;;  %v36_v7 = vld [vmem:[%s2948_s0 + $0x10] sm:$0xff]  ;;  %v130_v38 = vlaneseq  ;;  %vm404_vm0 = vcmask 523264  }
   0x9   :  { %v2248_v8 = vld [vmem:[%s2948_s0 + $0x38] sm:$0xff]  ;;  %v2254_v9 = vld [vmem:[%s2948_s0 + $0x48] sm:$0xff]  ;;  %v38_v13 = vld [vmem:[%s2948_s0 + $0x20] sm:$0xff]  ;;  %vm31_vm1 = vcmask 517120   ;;  %vm821_vm2 = vcmask 516096  }
   0xa   :  { %v2261_v10 = vld [vmem:[%s2948_s0 + $0x58] sm:$0xff]  ;;  %v2268_v11 = vld [vmem:[%s2948_s0 + $0x68] sm:$0xff]  ;;  %v40_v18 = vld [vmem:[%s2948_s0 + $0x30] sm:$0xff]  ;;  %v131_v39 = vshrl.u32 %v130_v38, 7 }
   0xb   :  { %2098 = vset.pattern.permute.xlu1 %v2171_v5  ;;  %67 = vperm.xlu0 %2095, %v2231_v4   ;;  %v2275_v12 = vld [vmem:[%s2948_s0 + $0x78] sm:$0xff]  ;;  %v2285_v14 = vld [vmem:[%s2948_s0 + $0x88] sm:$0xff]  ;;  %v389_v22 = vld [vmem:[%s2951_s3] sm:$0xff] }
   0xc   :  { %251 = vperm.xlu1 %2098, %v34_v1   ;;  %v2292_v15 = vld [vmem:[%s2948_s0 + $0x98] sm:$0xff]  ;;  %v2298_v16 = vld [vmem:[%s2948_s0 + $0xa8] sm:$0xff]  ;;  %v391_v26 = vld [vmem:[%s2951_s3 + $0x10] sm:$0xff]  ;;  %v216_v41 = vsub.s32 1, %v131_v39  ;;  %v132_v42 = vsub.s32 0, %v131_v39  ;;  %v316_v47 = vsub.s32 2, %v131_v39 }
   0xd   :  { %v2305_v17 = vld [vmem:[%s2948_s0 + $0xb8] sm:$0xff]  ;;  %v2315_v19 = vld [vmem:[%s2948_s0 + $0xc8] sm:$0xff]  ;;  %v393_v29 = vld [vmem:[%s2951_s3 + $0x20] sm:$0xff] }
   0xe   :  { %v2322_v20 = vld [vmem:[%s2948_s0 + $0xd8] sm:$0xff]  ;;  %v2329_v21 = vld [vmem:[%s2948_s0 + $0xe8] sm:$0xff]  ;;  %v42_v32 = vld [vmem:[%s2948_s0 + $0x40] sm:$0xff] }
   0xf   :  { %77 = vperm.xlu0 %2095, %v2238_v6   ;;  %v390_v23 = vld [vmem:[%s2951_s3 + $0x8] sm:$0xff]  ;;  %v2344_v25 = vld [vmem:[%s2948_s0 + $0xf8] sm:$0xff]  ;;  %v395_v33 = vld [vmem:[%s2951_s3 + $0x30] sm:$0xff] }
  0x10   :  { %2099 = vset.pattern.permute.xlu1 %v2170_v3  ;;  %v2337_v24 = vpack.c.bf16 %v390_v23, %v389_v22  ;;  %v392_v27 = vld [vmem:[%s2951_s3 + $0x18] sm:$0xff]  ;;  %v394_v30 = vld [vmem:[%s2951_s3 + $0x28] sm:$0xff]  ;;  %v44_v36 = vld [vmem:[%s2948_s0 + $0x50] sm:$0xff] }
  0x11   :  { %62 = vperm.xlu1 %2099, %v36_v7   ;;  %v2354_v28 = vpack.c.bf16 %v392_v27, %v391_v26  ;;  %v2366_v31 = vpack.c.bf16 %v394_v30, %v393_v29  ;;  %v396_v34 = vld [vmem:[%s2951_s3 + $0x38] sm:$0xff]  ;;  %v46_v37 = vld [vmem:[%s2948_s0 + $0x60] sm:$0xff]  ;;  %v48_v40 = vld [vmem:[%s2948_s0 + $0x70] sm:$0xff] }
  0x12   :  { %1978 = vmatprep.subr.bf16.mxu0 %v2337_v24  ;;  %v2382_v35 = vpack.c.bf16 %v396_v34, %v395_v33  ;;  %v33_v45 = vld [vmem:[%s2949_s1] sm:$0x7] }
  0x13   :  { %87 = vperm.xlu0 %2095, %v2248_v8   ;;  %1980 = vmatpush3.bf16.msra.mxu0 %v2337_v24  ;;  %v2427_v46 = vrot.slane %v33_v45, %v216_v41  ;;  %v2430_v48 = vrot.slane %v33_v45, %v132_v42  ;;  %v2437_v53 = vrot.slane %v33_v45, %v316_v47  ;;  %v2446_v58 = vld [vmem:[%s2950_s2] ss:$0 sm:$0xff] }
  0x14   :  { %1982 = vmatprep.subr.bf16.mxu0 %v2354_v28  ;;  %v1638_v1 = vld [vmem:[%s2948_s0 + $0x80] sm:$0xff] }
  0x15   :  { %2100 = vset.pattern.permute.xlu1 %v2169_v2  ;;  %v1642_v33 = vld [vmem:[%s2948_s0 + $0xa0] sm:$0xff] }
  0x16   :  { %159 = vperm.xlu1 %2100, %v36_v7  }
  0x17   :  { %97 = vperm.xlu0 %2095, %v2254_v9   ;;  %1984 = vmatpush3.bf16.msra.mxu0 %v2354_v28 }
  0x18   :  { %1986 = vmatprep.subr.bf16.mxu0 %v2366_v31 }
  0x1a   :  { %163 = vperm.xlu1 %2100, %v2231_v4  }
  0x1b   :  { %107 = vperm.xlu0 %2095, %v2261_v10   ;;  %1988 = vmatpush3.bf16.msra.mxu0 %v2366_v31 }
  0x1c   :  { %1990 = vmatprep.subr.bf16.mxu0 %v2382_v35 }
  0x1e   :  { %2101 = vset.pattern.permute.xlu1 %v2171_v5 }
  0x1f   :  { %259 = vperm.xlu1 %2101, %v36_v7   ;;  %117 = vperm.xlu0 %2095, %v2268_v11  }
  0x20   :  { %1992 = vmatpush3.bf16.msra.mxu0 %v2382_v35 }
  0x21   :  { %2026 = vmatprep.subr.bf16.mxu0 %v2337_v24 }
  0x23   :  { %2102 = vset.pattern.permute.xlu1 %v2170_v3  ;;  %127 = vperm.xlu0 %2095, %v2275_v12  }
  0x24   :  { %72 = vperm.xlu1 %2102, %v38_v13  }
  0x27   :  { %847 = vperm.xlu0 %2095, %v2285_v14  }
  0x28   :  { %2103 = vset.pattern.permute.xlu1 %v2169_v2 }
  0x29   :  { %167 = vperm.xlu1 %2103, %v38_v13  }
  0x2b   :  { %857 = vperm.xlu0 %2095, %v2292_v15  }
  0x2d   :  { %171 = vperm.xlu1 %2103, %v2238_v6  }
  0x2f   :  { %867 = vperm.xlu0 %2095, %v2298_v16  }
  0x31   :  { %2104 = vset.pattern.permute.xlu1 %v2171_v5 }
  0x32   :  { %267 = vperm.xlu1 %2104, %v38_v13  }
  0x33   :  { %877 = vperm.xlu0 %2095, %v2305_v17  }
  0x36   :  { %2105 = vset.pattern.permute.xlu1 %v2170_v3 }
  0x37   :  { %82 = vperm.xlu1 %2105, %v40_v18   ;;  %887 = vperm.xlu0 %2095, %v2315_v19  }
  0x3b   :  { %2106 = vset.pattern.permute.xlu1 %v2169_v2  ;;  %897 = vperm.xlu0 %2095, %v2322_v20  }
  0x3c   :  { %175 = vperm.xlu1 %2106, %v40_v18  }
  0x3f   :  { %907 = vperm.xlu0 %2095, %v2329_v21  }
  0x40   :  { %179 = vperm.xlu1 %2106, %v2248_v8  }
  0x43   :  { %917 = vperm.xlu0 %2095, %v2344_v25  }
  0x44   :  { %2107 = vset.pattern.permute.xlu1 %v2171_v5 }
  0x45   :  { %275 = vperm.xlu1 %2107, %v40_v18   ;;  %v1640_v18 = vld [vmem:[%s2948_s0 + $0x90] sm:$0xff] }
  0x47   :  { %2143 = vset.pattern.permute.xlu0 %v2171_v5 }
  0x48   :  { %255 = vperm.xlu0 %2143, %v2217_v0  }
  0x49   :  { %2108 = vset.pattern.permute.xlu1 %v2170_v3 }
  0x4a   :  { %92 = vperm.xlu1 %2108, %v42_v32  }
  0x4c   :  { %263 = vperm.xlu0 %2143, %v2231_v4  }
  0x4e   :  { %2109 = vset.pattern.permute.xlu1 %v2169_v2 }
  0x4f   :  { %183 = vperm.xlu1 %2109, %v42_v32  }
  0x50   :  { %271 = vperm.xlu0 %2143, %v2238_v6  }
  0x53   :  { %187 = vperm.xlu1 %2109, %v2254_v9  }
  0x54   :  { %279 = vperm.xlu0 %2143, %v2248_v8  }
  0x57   :  { %2110 = vset.pattern.permute.xlu1 %v2171_v5 }
  0x58   :  { %283 = vperm.xlu1 %2110, %v42_v32   ;;  %287 = vperm.xlu0 %2143, %v2254_v9  }
  0x5c   :  { %2111 = vset.pattern.permute.xlu1 %v2170_v3  ;;  %295 = vperm.xlu0 %2143, %v2261_v10  }
  0x5d   :  { %102 = vperm.xlu1 %2111, %v44_v36  }
  0x60   :  { %303 = vperm.xlu0 %2143, %v2268_v11  }
  0x61   :  { %2112 = vset.pattern.permute.xlu1 %v2169_v2 }
  0x62   :  { %191 = vperm.xlu1 %2112, %v44_v36  }
  0x64   :  { %311 = vperm.xlu0 %2143, %v2275_v12  }
  0x66   :  { %195 = vperm.xlu1 %2112, %v2261_v10  }
  0x68   :  { %1037 = vperm.xlu0 %2143, %v2285_v14  }
  0x6a   :  { %2113 = vset.pattern.permute.xlu1 %v2171_v5 }
  0x6b   :  { %291 = vperm.xlu1 %2113, %v44_v36  }
  0x6c   :  { %1045 = vperm.xlu0 %2143, %v2292_v15  }
  0x6f   :  { %2114 = vset.pattern.permute.xlu1 %v2170_v3 }
  0x70   :  { %112 = vperm.xlu1 %2114, %v46_v37   ;;  %1053 = vperm.xlu0 %2143, %v2298_v16  }
  0x74   :  { %2115 = vset.pattern.permute.xlu1 %v2169_v2  ;;  %1061 = vperm.xlu0 %2143, %v2305_v17  }
  0x75   :  { %199 = vperm.xlu1 %2115, %v46_v37  }
  0x78   :  { %1069 = vperm.xlu0 %2143, %v2315_v19  }
  0x79   :  { %203 = vperm.xlu1 %2115, %v2268_v11  }
  0x7c   :  { %1077 = vperm.xlu0 %2143, %v2322_v20  }
  0x7d   :  { %2116 = vset.pattern.permute.xlu1 %v2171_v5 }
  0x7e   :  { %299 = vperm.xlu1 %2116, %v46_v37  }
  0x80   :  { %1085 = vperm.xlu0 %2143, %v2329_v21  }
  0x81   :  { %v2421_v43 = vpop.permute.xlu1 %57  ;;  %v152_v44 = vpop.permute.xlu0 %151 }
  0x82   :  { %2117 = vset.pattern.permute.xlu1 %v2170_v3  ;;  %v218_v49 = vmul.f32 %v2427_v46, %v152_v44 }
  0x83   :  { %122 = vperm.xlu1 %2117, %v48_v40  }
  0x84   :  { %1093 = vperm.xlu0 %2143, %v2344_v25  }
  0x86   :  { %v2433_v50 = vpop.permute.xlu1 %155  ;;  %v53_v51 = vpop.permute.xlu0 %52 }
  0x87   :  { %2118 = vset.pattern.permute.xlu1 %v2169_v2  ;;  %v134_v52 = vmul.f32 %v2430_v48, %v53_v51  ;;  %v219_v42 = vmul.f32 %v2427_v46, %v2433_v50 }
  0x88   :  { %207 = vperm.xlu1 %2118, %v48_v40  }
  0x89   :  { %v234_v54 = vadd.f32 %v218_v49, %v134_v52  ;;  %v135_v49 = vmul.f32 %v2430_v48, %v2421_v43 }
  0x8a   :  { %v2439_v55 = vpop.permute.xlu0 %67 }
  0x8b   :  { %v252_v56 = vpop.permute.xlu1 %251 }
  0x8c   :  { %v318_v57 = vmul.f32 %v2437_v53, %v252_v56  ;;  %211 = vperm.xlu1 %2118, %v2275_v12  }
  0x8e   :  { %v334_v59 = vadd.f32 %v318_v57, %v234_v54  ;;  %v2448_v60 = vpop.permute.xlu0 %77  ;;  %v235_v57 = vadd.f32 %v219_v42, %v135_v49 }
  0x90   :  { %2119 = vset.pattern.permute.xlu1 %v2171_v5  ;;  %v63_v61 = vpop.permute.xlu1 %62  ;;  %v357_v62 = vadd.f32 %v2446_v58, %v334_v59  ;;  %v137_v59 = vmul.f32 %v2430_v48, %v2439_v55 }
  0x91   :  { %307 = vperm.xlu1 %2119, %v48_v40   ;;  %v136_v40 = vmul.f32 %v2430_v48, %v63_v61 }
  0x92   :  { %v2452_v63 = vpop.permute.xlu0 %87  ;;  %v373_v0 = vmax.f32 %v357_v62, 0.0 }
  0x94   :  { %1801 = vmatprep.mubr.msk.f32.mxu0 %vm404_vm0, %v373_v0  ;;  %v139_v0 = vmul.f32 %v2430_v48, %v2448_v60  ;;  %v1644_v60 = vld [vmem:[%s2948_s0 + $0xb0] sm:$0xff] }
  0x95   :  { %2120 = vset.pattern.permute.xlu1 %v2170_v3  ;;  %v160_v4 = vpop.permute.xlu1 %159 }
  0x96   :  { %842 = vperm.xlu1 %2120, %v1638_v1   ;;  %v2459_v6 = vpop.permute.xlu0 %97  ;;  %v220_v38 = vmul.f32 %v2427_v46, %v160_v4 }
  0x98   :  { %v236_v45 = vadd.f32 %v220_v38, %v136_v40 }
  0x99   :  { %v164_v7 = vpop.permute.xlu1 %163 }
  0x9a   :  { %2121 = vset.pattern.permute.xlu1 %v2169_v2  ;;  %v2462_v8 = vpop.permute.xlu0 %107  ;;  %v221_v50 = vmul.f32 %v2427_v46, %v164_v7 }
  0x9b   :  { %937 = vperm.xlu1 %2121, %v1638_v1  }
  0x9e   :  { %v260_v9 = vpop.permute.xlu1 %259  ;;  %v2464_v10 = vpop.permute.xlu0 %117 }
  0x9f   :  { %941 = vperm.xlu1 %2121, %v2285_v14   ;;  %v320_v41 = vmul.f32 %v2437_v53, %v260_v9 }
  0xa1   :  { %v336_v51 = vadd.f32 %v320_v41, %v236_v45  ;;  %v141_v41 = vmul.f32 %v2430_v48, %v2452_v63  ;;  %v143_v63 = vmul.f32 %v2430_v48, %v2459_v6 }
  0xa2   :  { %v2467_v11 = vpop.permute.xlu0 %127 }
  0xa3   :  { %2122 = vset.pattern.permute.xlu1 %v2171_v5  ;;  %v73_v12 = vpop.permute.xlu1 %72  ;;  %v359_v4 = vadd.f32 %v2446_v58, %v336_v51 }
  0xa4   :  { %1033 = vperm.xlu1 %2122, %v1638_v1   ;;  %v138_v52 = vmul.f32 %v2430_v48, %v73_v12 }
  0xa5   :  { %v375_v42 = vmax.f32 %v359_v4, 0.0 }
  0xa6   :  { %v2470_v13 = vpop.permute.xlu0 %847 }
  0xa8   :  { %2123 = vset.pattern.permute.xlu1 %v2170_v3  ;;  %v168_v22 = vpop.permute.xlu1 %167 }
  0xa9   :  { %852 = vperm.xlu1 %2123, %v1640_v18   ;;  %v222_v47 = vmul.f32 %v2427_v46, %v168_v22 }
  0xaa   :  { %v2476_v23 = vpop.permute.xlu0 %857 }
  0xab   :  { %v238_v62 = vadd.f32 %v222_v47, %v138_v52 }
  0xac   :  { %v172_v26 = vpop.permute.xlu1 %171 }
  0xad   :  { %2124 = vset.pattern.permute.xlu1 %v2169_v2  ;;  %v223_v22 = vmul.f32 %v2427_v46, %v172_v26 }
  0xae   :  { %945 = vperm.xlu1 %2124, %v1640_v18   ;;  %v2479_v14 = vpop.permute.xlu0 %867 }
  0xaf   :  { %v239_v47 = vadd.f32 %v223_v22, %v139_v0 }
  0xb1   :  { %v268_v27 = vpop.permute.xlu1 %267 }
  0xb2   :  { %949 = vperm.xlu1 %2124, %v2292_v15   ;;  %v2482_v29 = vpop.permute.xlu0 %877  ;;  %v322_v54 = vmul.f32 %v2437_v53, %v268_v27 }
  0xb4   :  { %v338_v9 = vadd.f32 %v322_v54, %v238_v62 }
  0xb6   :  { %2125 = vset.pattern.permute.xlu1 %v2171_v5  ;;  %v83_v30 = vpop.permute.xlu1 %82  ;;  %v2485_v32 = vpop.permute.xlu0 %887  ;;  %v361_v26 = vadd.f32 %v2446_v58, %v338_v9 }
  0xb7   :  { %1041 = vperm.xlu1 %2125, %v1640_v18   ;;  %v140_v55 = vmul.f32 %v2430_v48, %v83_v30  ;;  %v237_v18 = vadd.f32 %v221_v50, %v137_v59 }
  0xb8   :  { %v377_v59 = vmax.f32 %v361_v26, 0.0 }
  0xba   :  { %v2490_v34 = vpop.permute.xlu0 %897 }
  0xbb   :  { %2126 = vset.pattern.permute.xlu1 %v2170_v3  ;;  %v176_v36 = vpop.permute.xlu1 %175 }
  0xbc   :  { %862 = vperm.xlu1 %2126, %v1642_v33  }
  0xbe   :  { %v2493_v37 = vpop.permute.xlu0 %907 }
  0xbf   :  { %v180_v15 = vpop.permute.xlu1 %179 }
  0xc0   :  { %2127 = vset.pattern.permute.xlu1 %v2169_v2  ;;  %v225_v49 = vmul.f32 %v2427_v46, %v180_v15 }
  0xc1   :  { %953 = vperm.xlu1 %2127, %v1642_v33  }
  0xc2   :  { %v2497_v39 = vpop.permute.xlu0 %917 }
  0xc4   :  { %v276_v44 = vpop.permute.xlu1 %275 }
  0xc5   :  { %957 = vperm.xlu1 %2127, %v2298_v16   ;;  %v224_v16 = vmul.f32 %v2427_v46, %v176_v36  ;;  %v324_v7 = vmul.f32 %v2437_v53, %v276_v44 }
  0xc7   :  { %v256_v56 = vpop.permute.xlu0 %255 }
  0xc8   :  { %v319_v61 = vmul.f32 %v2437_v53, %v256_v56 }
  0xc9   :  { %2128 = vset.pattern.permute.xlu1 %v2171_v5  ;;  %v93_v43 = vpop.permute.xlu1 %92 }
  0xca   :  { %v335_v1 = vadd.f32 %v319_v61, %v235_v57  ;;  %1049 = vperm.xlu1 %2128, %v1642_v33   ;;  %v240_v33 = vadd.f32 %v224_v16, %v140_v55  ;;  %v241_v16 = vadd.f32 %v225_v49, %v141_v41  ;;  %v142_v0 = vmul.f32 %v2430_v48, %v93_v43 }
  0xcb   :  { %v264_v12 = vpop.permute.xlu0 %263 }
  0xcc   :  { %v358_v27 = vadd.f32 %v2446_v58, %v335_v1  ;;  %v321_v36 = vmul.f32 %v2437_v53, %v264_v12  ;;  %v340_v44 = vadd.f32 %v324_v7, %v240_v33 }
  0xce   :  { %v374_v38 = vmax.f32 %v358_v27, 0.0  ;;  %v337_v40 = vadd.f32 %v321_v36, %v237_v18  ;;  %2129 = vset.pattern.permute.xlu1 %v2170_v3  ;;  %v184_v30 = vpop.permute.xlu1 %183  ;;  %v363_v15 = vadd.f32 %v2446_v58, %v340_v44 }
  0xcf   :  { %872 = vperm.xlu1 %2129, %v1644_v60   ;;  %v272_v45 = vpop.permute.xlu0 %271  ;;  %v226_v50 = vmul.f32 %v2427_v46, %v184_v30 }
  0xd0   :  { %v360_v51 = vadd.f32 %v2446_v58, %v337_v40  ;;  %v323_v52 = vmul.f32 %v2437_v53, %v272_v45  ;;  %1802 = vmatmul.mubr.msk.f32.vlgmr.msra.gmra.mrb[0].mxu0 %vm404_vm0, %v374_v38  ;;  %v379_v9 = vmax.f32 %v363_v15, 0.0 }
  0xd1   :  { %1804 = vmatprep.mubr.msk.f32.mxu0 %vm404_vm0, %v375_v42  ;;  %2028 = vmatpush3.bf16.msra.mxu0 %v2337_v24  ;;  %v242_v55 = vadd.f32 %v226_v50, %v142_v0 }
  0xd2   :  { %v376_v54 = vmax.f32 %v360_v51, 0.0  ;;  %v339_v56 = vadd.f32 %v323_v52, %v239_v47  ;;  %v188_v57 = vpop.permute.xlu1 %187  ;;  %2030 = vmatprep.subr.bf16.mxu0 %v2354_v28 }
  0xd3   :  { %v227_v61 = vmul.f32 %v2427_v46, %v188_v57  ;;  %2130 = vset.pattern.permute.xlu1 %v2169_v2  ;;  %v280_v62 = vpop.permute.xlu0 %279 }
  0xd4   :  { %v362_v24 = vadd.f32 %v2446_v58, %v339_v56  ;;  %v325_v6 = vmul.f32 %v2437_v53, %v280_v62  ;;  %961 = vperm.xlu1 %2130, %v1644_v60   ;;  %1805 = vmatmul.mubr.msk.f32.gmra.mrb[2].mxu0 %vm404_vm0, %v376_v54  ;;  %v1648_v62 = vld [vmem:[%s2948_s0 + $0xd0] sm:$0xff] }
  0xd5   :  { %1807 = vmatprep.mubr.msk.f32.mxu0 %vm404_vm0, %v377_v59  ;;  %2032 = vmatpush3.bf16.msra.mxu0 %v2354_v28  ;;  %v243_v7 = vadd.f32 %v227_v61, %v143_v63 }
  0xd6   :  { %v378_v1 = vmax.f32 %v362_v24, 0.0  ;;  %v341_v4 = vadd.f32 %v325_v6, %v241_v16  ;;  %2034 = vmatprep.subr.bf16.mxu0 %v2366_v31  ;;  %v147_v24 = vmul.f32 %v2430_v48, %v2464_v10 }
  0xd7   :  { %v284_v12 = vpop.permute.xlu1 %283  ;;  %v288_v18 = vpop.permute.xlu0 %287 }
  0xd8   :  { %v364_v22 = vadd.f32 %v2446_v58, %v341_v4  ;;  %v326_v27 = vmul.f32 %v2437_v53, %v284_v12  ;;  %v327_v36 = vmul.f32 %v2437_v53, %v288_v18  ;;  %965 = vperm.xlu1 %2130, %v2305_v17   ;;  %1808 = vmatmul.mubr.msk.f32.gmra.mrb[4].mxu0 %vm404_vm0, %v378_v1 }
  0xd9   :  { %1810 = vmatprep.mubr.msk.f32.mxu0 %vm404_vm0, %v379_v9  ;;  %2036 = vmatpush3.bf16.msra.mxu0 %v2366_v31  ;;  %v1646_v31 = vld [vmem:[%s2948_s0 + $0xc0] sm:$0xff] }
  0xda   :  { %v380_v28 = vmax.f32 %v364_v22, 0.0  ;;  %v342_v43 = vadd.f32 %v326_v27, %v242_v55  ;;  %v343_v33 = vadd.f32 %v327_v36, %v243_v7  ;;  %2038 = vmatprep.subr.bf16.mxu0 %v2382_v35 }
  0xdb   :  { %v296_v26 = vpop.permute.xlu0 %295 }
  0xdc   :  { %v365_v38 = vadd.f32 %v2446_v58, %v342_v43  ;;  %v366_v40 = vadd.f32 %v2446_v58, %v343_v33  ;;  %2131 = vset.pattern.permute.xlu1 %v2171_v5  ;;  %v103_v30 = vpop.permute.xlu1 %102  ;;  %1811 = vmatmul.mubr.msk.f32.gmra.mrb[6].mxu0 %vm404_vm0, %v380_v28  ;;  %v329_v45 = vmul.f32 %v2437_v53, %v296_v26  ;;  %v616_v26 = vld [vmem:[%s2953_s5 + $0x10] sm:$0xff] }
  0xdd   :  { %1057 = vperm.xlu1 %2131, %v1644_v60   ;;  %2040 = vmatpush3.bf16.msra.mxu0 %v2382_v35  ;;  %v145_v60 = vmul.f32 %v2430_v48, %v2462_v8  ;;  %v144_v51 = vmul.f32 %v2430_v48, %v103_v30  ;;  %v615_v30 = vld [vmem:[%s2953_s5 + $0x8] sm:$0xff] }
  0xde   :  { %v381_v17 = vmax.f32 %v365_v38, 0.0  ;;  %v382_v41 = vmax.f32 %v366_v40, 0.0  ;;  %v1650_v38 = vld [vmem:[%s2948_s0 + $0xe0] sm:$0xff] }
  0xdf   :  { %v304_v16 = vpop.permute.xlu0 %303  ;;  %v614_v40 = vld [vmem:[%s2953_s5] sm:$0xff] }
  0xe0   :  { %1813 = vmatprep.mubr.msk.f32.mxu0 %vm404_vm0, %v381_v17  ;;  %v331_v1 = vmul.f32 %v2437_v53, %v304_v16  ;;  %v2611_v17 = vpack.c.bf16 %v615_v30, %v614_v40  ;;  %v628_v40 = vld [vmem:[%s2953_s5 + $0x70] sm:$0xff]  ;;  %v629_v30 = vld [vmem:[%s2953_s5 + $0x78] sm:$0xff] }
  0xe1   :  { %2132 = vset.pattern.permute.xlu1 %v2170_v3  ;;  %v192_v42 = vpop.permute.xlu1 %191  ;;  %1814 = vmatmul.mubr.msk.f32.gmra.mrb[8].mxu0 %vm404_vm0, %v382_v41 }
  0xe2   :  { %882 = vperm.xlu1 %2132, %v1646_v31   ;;  %v228_v47 = vmul.f32 %v2427_v46, %v192_v42  ;;  %1994 = vmatprep.subr.bf16.mxu1 %v2611_v17 }
  0xe3   :  { %v312_v41 = vpop.permute.xlu0 %311  ;;  %2042 = vmatprep.subr.bf16.mxu0 %v2611_v17  ;;  %1996 = vmatpush3.bf16.msra.mxu1 %v2611_v17 }
  0xe4   :  { %v244_v54 = vadd.f32 %v228_v47, %v144_v51  ;;  %v618_v51 = vld [vmem:[%s2953_s5 + $0x20] sm:$0xff] }
  0xe5   :  { %v196_v44 = vpop.permute.xlu1 %195 }
  0xe6   :  { %v229_v35 = vmul.f32 %v2427_v46, %v196_v44  ;;  %2133 = vset.pattern.permute.xlu1 %v2169_v2 }
  0xe7   :  { %969 = vperm.xlu1 %2133, %v1646_v31  }
  0xe8   :  { %v245_v49 = vadd.f32 %v229_v35, %v145_v60  ;;  %v617_v60 = vld [vmem:[%s2953_s5 + $0x18] sm:$0xff] }
  0xe9   :  { %v2627_v35 = vpack.c.bf16 %v617_v60, %v616_v26 }
  0xea   :  { %v345_v52 = vadd.f32 %v329_v45, %v245_v49  ;;  %v292_v63 = vpop.permute.xlu1 %291 }
  0xeb   :  { %v328_v56 = vmul.f32 %v2437_v53, %v292_v63  ;;  %973 = vperm.xlu1 %2133, %v2315_v19   ;;  %1998 = vmatprep.subr.bf16.mxu1 %v2627_v35 }
  0xec   :  { %v368_v57 = vadd.f32 %v2446_v58, %v345_v52  ;;  %2000 = vmatpush3.bf16.msra.mxu1 %v2627_v35  ;;  %v619_v52 = vld [vmem:[%s2953_s5 + $0x28] sm:$0xff] }
  0xed   :  { %v344_v8 = vadd.f32 %v328_v56, %v244_v54  ;;  %v2639_v56 = vpack.c.bf16 %v619_v52, %v618_v51 }
  0xee   :  { %v384_v61 = vmax.f32 %v368_v57, 0.0 }
  0xef   :  { %v367_v59 = vadd.f32 %v2446_v58, %v344_v8  ;;  %2134 = vset.pattern.permute.xlu1 %v2171_v5  ;;  %v113_v15 = vpop.permute.xlu1 %112  ;;  %2002 = vmatprep.subr.bf16.mxu1 %v2639_v56 }
  0xf0   :  { %1065 = vperm.xlu1 %2134, %v1646_v31   ;;  %v146_v55 = vmul.f32 %v2430_v48, %v113_v15  ;;  %v149_v31 = vmul.f32 %v2430_v48, %v2467_v11  ;;  %v333_v11 = vmul.f32 %v2437_v53, %v312_v41  ;;  %2004 = vmatpush3.bf16.msra.mxu1 %v2639_v56  ;;  %v620_v15 = vld [vmem:[%s2953_s5 + $0x30] sm:$0xff] }
  0xf1   :  { %v383_v50 = vmax.f32 %v367_v59, 0.0 }
  0xf3   :  { %1816 = vmatprep.mubr.msk.f32.mxu0 %vm404_vm0, %v383_v50  ;;  %v621_v50 = vld [vmem:[%s2953_s5 + $0x38] sm:$0xff] }
  0xf4   :  { %2135 = vset.pattern.permute.xlu1 %v2170_v3  ;;  %v200_v19 = vpop.permute.xlu1 %199  ;;  %1817 = vmatmul.mubr.msk.f32.gmra.mrb[10].mxu0 %vm404_vm0, %v384_v61 }
  0xf5   :  { %892 = vperm.xlu1 %2135, %v1648_v62   ;;  %v230_v4 = vmul.f32 %v2427_v46, %v200_v19 }
  0xf7   :  { %v246_v18 = vadd.f32 %v230_v4, %v146_v55  ;;  %v624_v55 = vld [vmem:[%s2953_s5 + $0x50] sm:$0xff] }
  0xf8   :  { %v204_v6 = vpop.permute.xlu1 %203 }
  0xf9   :  { %v231_v0 = vmul.f32 %v2427_v46, %v204_v6  ;;  %2136 = vset.pattern.permute.xlu1 %v2169_v2  ;;  %v623_v6 = vld [vmem:[%s2953_s5 + $0x48] sm:$0xff] }
  0xfa   :  { %977 = vperm.xlu1 %2136, %v1648_v62  }
  0xfb   :  { %v247_v9 = vadd.f32 %v231_v0, %v147_v24  ;;  %v622_v24 = vld [vmem:[%s2953_s5 + $0x40] sm:$0xff] }
  0xfc   :  { %v2667_v4 = vpack.c.bf16 %v623_v6, %v622_v24 }
  0xfd   :  { %v347_v7 = vadd.f32 %v331_v1, %v247_v9  ;;  %v300_v12 = vpop.permute.xlu1 %299  ;;  %v1652_v1 = vld [vmem:[%s2948_s0 + $0xf0] sm:$0xff] }
  0xfe   :  { %v330_v22 = vmul.f32 %v2437_v53, %v300_v12  ;;  %981 = vperm.xlu1 %2136, %v2322_v20   ;;  %v1038_v12 = vpop.permute.xlu0 %1037 }
  0xff   :  { %v370_v27 = vadd.f32 %v2446_v58, %v347_v7  ;;  %v625_v7 = vld [vmem:[%s2953_s5 + $0x58] sm:$0xff] }
 0x100   :  { %v346_v10 = vadd.f32 %v330_v22, %v246_v18  ;;  %v2680_v18 = vpack.c.bf16 %v625_v7, %v624_v55  ;;  %v925_v55 = vmul.f32 %v2479_v14, %v2430_v48 }
 0x101   :  { %v386_v33 = vmax.f32 %v370_v27, 0.0  ;;  %v1097_v27 = vmul.f32 %v1038_v12, %v2437_v53 }
 0x102   :  { %v369_v36 = vadd.f32 %v2446_v58, %v346_v10  ;;  %2137 = vset.pattern.permute.xlu1 %v2171_v5  ;;  %v123_v28 = vpop.permute.xlu1 %122 }
 0x103   :  { %1073 = vperm.xlu1 %2137, %v1648_v62   ;;  %v148_v49 = vmul.f32 %v2430_v48, %v123_v28  ;;  %v2652_v62 = vpack.c.bf16 %v621_v50, %v620_v15  ;;  %v627_v28 = vld [vmem:[%s2953_s5 + $0x68] sm:$0xff] }
 0x104   :  { %v385_v43 = vmax.f32 %v369_v36, 0.0  ;;  %v626_v36 = vld [vmem:[%s2953_s5 + $0x60] sm:$0xff] }
 0x105   :  { %2006 = vmatprep.subr.bf16.mxu1 %v2652_v62 }
 0x106   :  { %1819 = vmatprep.mubr.msk.f32.mxu0 %vm404_vm0, %v385_v43  ;;  %2008 = vmatpush3.bf16.msra.mxu1 %v2652_v62 }
 0x107   :  { %2138 = vset.pattern.permute.xlu1 %v2170_v3  ;;  %v208_v20 = vpop.permute.xlu1 %207  ;;  %1820 = vmatmul.mubr.msk.f32.gmra.mrb[12].mxu0 %vm404_vm0, %v386_v33 }
 0x108   :  { %902 = vperm.xlu1 %2138, %v1650_v38   ;;  %v232_v45 = vmul.f32 %v2427_v46, %v208_v20  ;;  %2010 = vmatprep.subr.bf16.mxu1 %v2667_v4 }
 0x10a   :  { %v248_v8 = vadd.f32 %v232_v45, %v148_v49  ;;  %2012 = vmatpush3.bf16.msra.mxu1 %v2667_v4  ;;  %v1046_v49 = vpop.permute.xlu0 %1045 }
 0x10b   :  { %v212_v42 = vpop.permute.xlu1 %211  ;;  %2014 = vmatprep.subr.bf16.mxu1 %v2680_v18 }
 0x10c   :  { %v233_v44 = vmul.f32 %v2427_v46, %v212_v42  ;;  %2139 = vset.pattern.permute.xlu1 %v2169_v2  ;;  %v2709_v42 = vpack.c.bf16 %v629_v30, %v628_v40 }
 0x10d   :  { %985 = vperm.xlu1 %2139, %v1650_v38  }
 0x10e   :  { %v249_v47 = vadd.f32 %v233_v44, %v149_v31  ;;  %2016 = vmatpush3.bf16.msra.mxu1 %v2680_v18 }
 0x110   :  { %v349_v63 = vadd.f32 %v333_v11, %v249_v47  ;;  %v308_v54 = vpop.permute.xlu1 %307 }
 0x111   :  { %v332_v57 = vmul.f32 %v2437_v53, %v308_v54  ;;  %989 = vperm.xlu1 %2139, %v2329_v21  }
 0x112   :  { %v372_v61 = vadd.f32 %v2446_v58, %v349_v63  ;;  %v1099_v63 = vmul.f32 %v1046_v49, %v2437_v53 }
 0x113   :  { %v348_v59 = vadd.f32 %v332_v57, %v248_v8 }
 0x114   :  { %v388_v0 = vmax.f32 %v372_v61, 0.0 }
 0x115   :  { %v371_v19 = vadd.f32 %v2446_v58, %v348_v59  ;;  %2140 = vset.pattern.permute.xlu1 %v2171_v5  ;;  %v843_v21 = vpop.permute.xlu1 %842 }
 0x116   :  { %1081 = vperm.xlu1 %2140, %v1650_v38  }
 0x117   :  { %v387_v16 = vmax.f32 %v371_v19, 0.0 }
 0x119   :  { %1822 = vmatprep.mubr.msk.f32.mxu0 %vm404_vm0, %v387_v16 }
 0x11a   :  { %2141 = vset.pattern.permute.xlu1 %v2170_v3  ;;  %v938_v9 = vpop.permute.xlu1 %937  ;;  %1823 = vmatmul.mubr.msk.f32.gmra.mrb[14].mxu0 %vm404_vm0, %v388_v0  ;;  %v921_v3 = vmul.f32 %v2470_v13, %v2430_v48  ;;  %v2696_v13 = vpack.c.bf16 %v627_v28, %v626_v36 }
 0x11b   :  { %912 = vperm.xlu1 %2141, %v1652_v1   ;;  %v1000_v43 = vmul.f32 %v938_v9, %v2427_v46 }
 0x11c   :  { %2018 = vmatprep.subr.bf16.mxu1 %v2696_v13 }
 0x11d   :  { %2020 = vmatpush3.bf16.msra.mxu1 %v2696_v13 }
 0x11e   :  { %v942_v22 = vpop.permute.xlu1 %941  ;;  %2022 = vmatprep.subr.bf16.mxu1 %v2709_v42 }
 0x11f   :  { %v1001_v10 = vmul.f32 %v942_v22, %v2427_v46  ;;  %2142 = vset.pattern.permute.xlu1 %v2169_v2  ;;  %v920_v2 = vmul.f32 %v843_v21, %v2430_v48 }
 0x120   :  { %993 = vperm.xlu1 %2142, %v1652_v1  }
 0x121   :  { %v1017_v33 = vadd.f32 %v1001_v10, %v921_v3  ;;  %v1016_v41 = vadd.f32 %v1000_v43, %v920_v2  ;;  %2024 = vmatpush3.bf16.msra.mxu1 %v2709_v42 }
 0x122   :  { %2073 = vmatprep.subr.bf16.mxu1 %v2611_v17 }
 0x123   :  { %v1113_v38 = vadd.f32 %v1097_v27, %v1017_v33  ;;  %v1034_v20 = vpop.permute.xlu1 %1033 }
 0x124   :  { %v1096_v31 = vmul.f32 %v1034_v20, %v2437_v53  ;;  %997 = vperm.xlu1 %2142, %v2344_v25  }
 0x125   :  { %v1136_v60 = vadd.f32 %v2446_v58, %v1113_v38 }
 0x126   :  { %v1112_v26 = vadd.f32 %v1096_v31, %v1016_v41 }
 0x127   :  { %v1152_v45 = vmax.f32 %v1136_v60, 0.0 }
 0x128   :  { %v1135_v44 = vadd.f32 %v2446_v58, %v1112_v26  ;;  %2144 = vset.pattern.permute.xlu1 %v2171_v5  ;;  %v853_v11 = vpop.permute.xlu1 %852  ;;  %v923_v5 = vmul.f32 %v2476_v23, %v2430_v48  ;;  %v927_v26 = vmul.f32 %v2482_v29, %v2430_v48 }
 0x129   :  { %1089 = vperm.xlu1 %2144, %v1652_v1   ;;  %v922_v57 = vmul.f32 %v853_v11, %v2430_v48  ;;  %v1054_v1 = vpop.permute.xlu0 %1053 }
 0x12a   :  { %v1151_v25 = vmax.f32 %v1135_v44, 0.0  ;;  %v1101_v12 = vmul.f32 %v1054_v1, %v2437_v53 }
 0x12c   :  { %1897 = vmatprep.mubr.msk.f32.mxu0 %vm404_vm0, %v1151_v25 }
 0x12d   :  { %v946_v47 = vpop.permute.xlu1 %945  ;;  %1898 = vmatmul.mubr.msk.f32.vlgmr.msra.gmra.mrb[16].mxu0 %vm404_vm0, %v1152_v45  ;;  %v1062_v41 = vpop.permute.xlu0 %1061 }
 0x12e   :  { %2044 = vmatpush3.bf16.msra.mxu0 %v2611_v17  ;;  %v1002_v54 = vmul.f32 %v946_v47, %v2427_v46  ;;  %v1103_v44 = vmul.f32 %v1062_v41, %v2437_v53 }
 0x12f   :  { %2046 = vmatprep.subr.bf16.mxu0 %v2627_v35 }
 0x130   :  { %v1018_v50 = vadd.f32 %v1002_v54, %v922_v57 }
 0x131   :  { %v950_v51 = vpop.permute.xlu1 %949 }
 0x132   :  { %v1003_v52 = vmul.f32 %v950_v51, %v2427_v46  ;;  %2048 = vmatpush3.bf16.msra.mxu0 %v2627_v35 }
 0x133   :  { %2050 = vmatprep.subr.bf16.mxu0 %v2639_v56 }
 0x134   :  { %v1019_v8 = vadd.f32 %v1003_v52, %v923_v5 }
 0x136   :  { %v1115_v59 = vadd.f32 %v1099_v63, %v1019_v8  ;;  %v1042_v15 = vpop.permute.xlu1 %1041  ;;  %2052 = vmatpush3.bf16.msra.mxu0 %v2639_v56 }
 0x137   :  { %v1098_v23 = vmul.f32 %v1042_v15, %v2437_v53  ;;  %2054 = vmatprep.subr.bf16.mxu0 %v2652_v62  ;;  %v1070_v15 = vpop.permute.xlu0 %1069 }
 0x138   :  { %v1138_v19 = vadd.f32 %v2446_v58, %v1115_v59 }
 0x139   :  { %v1114_v61 = vadd.f32 %v1098_v23, %v1018_v50  ;;  %v929_v23 = vmul.f32 %v2485_v32, %v2430_v48 }
 0x13a   :  { %2056 = vmatpush3.bf16.msra.mxu0 %v2652_v62  ;;  %v1154_v6 = vmax.f32 %v1138_v19, 0.0 }
 0x13b   :  { %v1137_v21 = vadd.f32 %v2446_v58, %v1114_v61  ;;  %v863_v16 = vpop.permute.xlu1 %862  ;;  %2058 = vmatprep.subr.bf16.mxu0 %v2667_v4  ;;  %v1105_v61 = vmul.f32 %v1070_v15, %v2437_v53 }
 0x13c   :  { %v924_v10 = vmul.f32 %v863_v16, %v2430_v48 }
 0x13d   :  { %v1153_v24 = vmax.f32 %v1137_v21, 0.0 }
 0x13e   :  { %2060 = vmatpush3.bf16.msra.mxu0 %v2667_v4 }
 0x13f   :  { %1900 = vmatprep.mubr.msk.f32.mxu0 %vm404_vm0, %v1153_v24  ;;  %2062 = vmatprep.subr.bf16.mxu0 %v2680_v18 }
 0x140   :  { %v954_v0 = vpop.permute.xlu1 %953  ;;  %1901 = vmatmul.mubr.msk.f32.gmra.mrb[18].mxu0 %vm404_vm0, %v1154_v6 }
 0x141   :  { %v1004_v3 = vmul.f32 %v954_v0, %v2427_v46 }
 0x142   :  { %2064 = vmatpush3.bf16.msra.mxu0 %v2680_v18 }
 0x143   :  { %2066 = vmatprep.subr.bf16.mxu0 %v2696_v13  ;;  %v1020_v28 = vadd.f32 %v1004_v3, %v924_v10 }
 0x144   :  { %v958_v9 = vpop.permute.xlu1 %957 }
 0x145   :  { %v1005_v7 = vmul.f32 %v958_v9, %v2427_v46 }
 0x146   :  { %2068 = vmatpush3.bf16.msra.mxu0 %v2696_v13 }
 0x147   :  { %v1021_v22 = vadd.f32 %v1005_v7, %v925_v55  ;;  %2070 = vmatprep.subr.bf16.mxu0 %v2709_v42 }
 0x149   :  { %v1117_v27 = vadd.f32 %v1101_v12, %v1021_v22  ;;  %v1050_v36 = vpop.permute.xlu1 %1049 }
 0x14a   :  { %v1100_v43 = vmul.f32 %v1050_v36, %v2437_v53  ;;  %2072 = vmatpush3.bf16.msra.mxu0 %v2709_v42  ;;  %v931_v36 = vmul.f32 %v2490_v34, %v2430_v48 }
 0x14b   :  { %v1140_v33 = vadd.f32 %v2446_v58, %v1117_v27 }
 0x14c   :  { %v1116_v14 = vadd.f32 %v1100_v43, %v1020_v28  ;;  %v1078_v43 = vpop.permute.xlu0 %1077 }
 0x14d   :  { %v1156_v40 = vmax.f32 %v1140_v33, 0.0  ;;  %v1107_v33 = vmul.f32 %v1078_v43, %v2437_v53 }
 0x14e   :  { %v1139_v2 = vadd.f32 %v2446_v58, %v1116_v14  ;;  %v873_v38 = vpop.permute.xlu1 %872 }
 0x14f   :  { %v926_v45 = vmul.f32 %v873_v38, %v2430_v48 }
 0x150   :  { %v1155_v20 = vmax.f32 %v1139_v2, 0.0 }
 0x152   :  { %1903 = vmatprep.mubr.msk.f32.mxu0 %vm404_vm0, %v1155_v20 }
 0x153   :  { %v962_v30 = vpop.permute.xlu1 %961  ;;  %1904 = vmatmul.mubr.msk.f32.gmra.mrb[20].mxu0 %vm404_vm0, %v1156_v40 }
 0x154   :  { %v1006_v11 = vmul.f32 %v962_v30, %v2427_v46 }
 0x156   :  { %v1022_v51 = vadd.f32 %v1006_v11, %v926_v45 }
 0x157   :  { %v966_v31 = vpop.permute.xlu1 %965 }
 0x158   :  { %v1007_v60 = vmul.f32 %v966_v31, %v2427_v46 }
 0x15a   :  { %v1023_v25 = vadd.f32 %v1007_v60, %v927_v26 }
 0x15c   :  { %v1119_v47 = vadd.f32 %v1103_v44, %v1023_v25  ;;  %v1058_v49 = vpop.permute.xlu1 %1057 }
 0x15d   :  { %v1102_v5 = vmul.f32 %v1058_v49, %v2437_v53 }
 0x15e   :  { %v1142_v63 = vadd.f32 %v2446_v58, %v1119_v47  ;;  %v933_v47 = vmul.f32 %v2493_v37, %v2430_v48 }
 0x15f   :  { %v1118_v52 = vadd.f32 %v1102_v5, %v1022_v51  ;;  %v1086_v51 = vpop.permute.xlu0 %1085 }
 0x160   :  { %v1158_v57 = vmax.f32 %v1142_v63, 0.0 }
 0x161   :  { %v1141_v54 = vadd.f32 %v2446_v58, %v1118_v52  ;;  %v883_v29 = vpop.permute.xlu1 %882  ;;  %v1109_v52 = vmul.f32 %v1086_v51, %v2437_v53 }
 0x162   :  { %v928_v24 = vmul.f32 %v883_v29, %v2430_v48 }
 0x163   :  { %v1157_v8 = vmax.f32 %v1141_v54, 0.0 }
 0x165   :  { %1906 = vmatprep.mubr.msk.f32.mxu0 %vm404_vm0, %v1157_v8 }
 0x166   :  { %v970_v59 = vpop.permute.xlu1 %969  ;;  %1907 = vmatmul.mubr.msk.f32.gmra.mrb[22].mxu0 %vm404_vm0, %v1158_v57 }
 0x167   :  { %v1008_v21 = vmul.f32 %v970_v59, %v2427_v46 }
 0x169   :  { %v1024_v1 = vadd.f32 %v1008_v21, %v928_v24  ;;  %v1094_v24 = vpop.permute.xlu0 %1093 }
 0x16a   :  { %v974_v50 = vpop.permute.xlu1 %973 }
 0x16b   :  { %v1009_v19 = vmul.f32 %v974_v50, %v2427_v46 }
 0x16d   :  { %v1025_v16 = vadd.f32 %v1009_v19, %v929_v23 }
 0x16f   :  { %v1121_v6 = vadd.f32 %v1105_v61, %v1025_v16  ;;  %v1066_v0 = vpop.permute.xlu1 %1065  ;;  %v2803_v16 = vld [vmem:[%s2952_s4] ss:$0 sm:$0xff] }
 0x170   :  { %v1104_v9 = vmul.f32 %v1066_v0, %v2437_v53 }
 0x171   :  { %v1144_v7 = vadd.f32 %v2446_v58, %v1121_v6 }
 0x172   :  { %v1120_v55 = vadd.f32 %v1104_v9, %v1024_v1  ;;  %v935_v1 = vmul.f32 %v2497_v39, %v2430_v48 }
 0x173   :  { %v1160_v22 = vmax.f32 %v1144_v7, 0.0 }
 0x174   :  { %v1143_v12 = vadd.f32 %v2446_v58, %v1120_v55  ;;  %v893_v32 = vpop.permute.xlu1 %892 }
 0x175   :  { %v930_v38 = vmul.f32 %v893_v32, %v2430_v48 }
 0x176   :  { %v1159_v3 = vmax.f32 %v1143_v12, 0.0 }
 0x178   :  { %1909 = vmatprep.mubr.msk.f32.mxu0 %vm404_vm0, %v1159_v3  ;;  %v1111_v3 = vmul.f32 %v1094_v24, %v2437_v53 }
 0x179   :  { %v978_v10 = vpop.permute.xlu1 %977  ;;  %1910 = vmatmul.mubr.msk.f32.gmra.mrb[24].mxu0 %vm404_vm0, %v1160_v22 }
 0x17a   :  { %v1010_v14 = vmul.f32 %v978_v10, %v2427_v46 }
 0x17c   :  { %v1026_v30 = vadd.f32 %v1010_v14, %v930_v38 }
 0x17d   :  { %v982_v27 = vpop.permute.xlu1 %981 }
 0x17e   :  { %v1011_v28 = vmul.f32 %v982_v27, %v2427_v46 }
 0x180   :  { %v1027_v2 = vadd.f32 %v1011_v28, %v931_v36 }
 0x182   :  { %v1123_v20 = vadd.f32 %v1107_v33, %v1027_v2  ;;  %v1074_v40 = vpop.permute.xlu1 %1073 }
 0x183   :  { %v1106_v41 = vmul.f32 %v1074_v40, %v2437_v53 }
 0x184   :  { %v1146_v26 = vadd.f32 %v2446_v58, %v1123_v20 }
 0x185   :  { %v1122_v31 = vadd.f32 %v1106_v41, %v1026_v30 }
 0x186   :  { %v1162_v11 = vmax.f32 %v1146_v26, 0.0 }
 0x187   :  { %v1145_v34 = vadd.f32 %v2446_v58, %v1122_v31  ;;  %v903_v60 = vpop.permute.xlu1 %902 }
 0x188   :  { %v932_v54 = vmul.f32 %v903_v60, %v2430_v48 }
 0x189   :  { %v1161_v44 = vmax.f32 %v1145_v34, 0.0 }
 0x18b   :  { %1912 = vmatprep.mubr.msk.f32.mxu0 %vm404_vm0, %v1161_v44 }
 0x18c   :  { %v986_v25 = vpop.permute.xlu1 %985  ;;  %1913 = vmatmul.mubr.msk.f32.gmra.mrb[26].mxu0 %vm404_vm0, %v1162_v11 }
 0x18d   :  { %v1012_v5 = vmul.f32 %v986_v25, %v2427_v46 }
 0x18f   :  { %v1028_v57 = vadd.f32 %v1012_v5, %v932_v54 }
 0x190   :  { %v990_v45 = vpop.permute.xlu1 %989 }
 0x191   :  { %v1013_v49 = vmul.f32 %v990_v45, %v2427_v46 }
 0x193   :  { %v1029_v63 = vadd.f32 %v1013_v49, %v933_v47 }
 0x195   :  { %v1125_v29 = vadd.f32 %v1109_v52, %v1029_v63  ;;  %v1082_v8 = vpop.permute.xlu1 %1081 }
 0x196   :  { %v1108_v59 = vmul.f32 %v1082_v8, %v2437_v53 }
 0x197   :  { %v1148_v50 = vadd.f32 %v2446_v58, %v1125_v29 }
 0x198   :  { %v1124_v15 = vadd.f32 %v1108_v59, %v1028_v57 }
 0x199   :  { %v1164_v19 = vmax.f32 %v1148_v50, 0.0 }
 0x19a   :  { %v1147_v37 = vadd.f32 %v2446_v58, %v1124_v15  ;;  %v913_v23 = vpop.permute.xlu1 %912 }
 0x19b   :  { %v934_v10 = vmul.f32 %v913_v23, %v2430_v48 }
 0x19c   :  { %v1163_v61 = vmax.f32 %v1147_v37, 0.0 }
 0x19e   :  { %1915 = vmatprep.mubr.msk.f32.mxu0 %vm404_vm0, %v1163_v61 }
 0x19f   :  { %v994_v21 = vpop.permute.xlu1 %993  ;;  %1916 = vmatmul.mubr.msk.f32.gmra.mrb[28].mxu0 %vm404_vm0, %v1164_v19 }
 0x1a0   :  { %v1014_v12 = vmul.f32 %v994_v21, %v2427_v46 }
 0x1a2   :  { %v1030_v2 = vadd.f32 %v1014_v12, %v934_v10 }
 0x1a3   :  { %v998_v6 = vpop.permute.xlu1 %997  ;;  %v1803_v0 = vpop.f32.mrb[0].mxu0 }
 0x1a4   :  { %v1015_v9 = vmul.f32 %v998_v6, %v2427_v46  ;;  %v525_v55 = vadd.f32 %v1803_v0, %v2803_v16  ;;  %v519_v7 = vpop.f32.mrb[1].mxu0 }
 0x1a5   :  { %v520_v32 = vadd.f32 %v2803_v16, %v519_v7 }
 0x1a6   :  { %v1031_v22 = vadd.f32 %v1015_v9, %v935_v1  ;;  %v599_v43 = vmax.f32 %v525_v55, 0.0 }
 0x1a7   :  { %v1806_v27 = vpop.f32.mrb[2].mxu0  ;;  %v598_v36 = vmax.f32 %v520_v32, 0.0 }
 0x1a8   :  { %v1127_v28 = vadd.f32 %v1111_v3, %v1031_v22  ;;  %v535_v39 = vadd.f32 %v1806_v27, %v2803_v16  ;;  %v1090_v14 = vpop.permute.xlu1 %1089  ;;  %v529_v33 = vpop.f32.mrb[3].mxu0 }
 0x1a9   :  { %v1110_v38 = vmul.f32 %v1090_v14, %v2437_v53  ;;  %v530_v46 = vadd.f32 %v2803_v16, %v529_v33  ;;  %1857 = vmatprep.mubr.f32.mxu1 %v598_v36 }
 0x1aa   :  { %1858 = vmatmul.mubr.f32.vlgmr.msra.gmra.mrb[0].mxu1 %v599_v43  ;;  %v1150_v48 = vadd.f32 %v2446_v58, %v1127_v28  ;;  %v601_v41 = vmax.f32 %v535_v39, 0.0 }
 0x1ab   :  { %v1126_v20 = vadd.f32 %v1110_v38, %v1030_v2  ;;  %v600_v40 = vmax.f32 %v530_v46, 0.0  ;;  %v1809_v30 = vpop.f32.mrb[4].mxu0  ;;  %2081 = vmatpush3.bf16.msra.mxu1 %v2611_v17 }
 0x1ac   :  { %v545_v31 = vadd.f32 %v1809_v30, %v2803_v16  ;;  %v539_v26 = vpop.f32.mrb[5].mxu0  ;;  %2074 = vmatprep.subr.bf16.mxu1 %v2627_v35  ;;  %v1166_v17 = vmax.f32 %v1150_v48, 0.0 }
 0x1ad   :  { %v1149_v34 = vadd.f32 %v2446_v58, %v1126_v20  ;;  %v540_v53 = vadd.f32 %v2803_v16, %v539_v26  ;;  %1860 = vmatprep.mubr.f32.mxu1 %v600_v40 }
 0x1ae   :  { %1861 = vmatmul.mubr.f32.gmra.mrb[2].mxu1 %v601_v41  ;;  %v603_v25 = vmax.f32 %v545_v31, 0.0 }
 0x1af   :  { %v1165_v60 = vmax.f32 %v1149_v34, 0.0  ;;  %v602_v44 = vmax.f32 %v540_v53, 0.0  ;;  %v1812_v11 = vpop.f32.mrb[6].mxu0  ;;  %2082 = vmatpush3.bf16.msra.mxu1 %v2627_v35 }
 0x1b0   :  { %v555_v45 = vadd.f32 %v1812_v11, %v2803_v16  ;;  %v549_v47 = vpop.f32.mrb[7].mxu0  ;;  %2075 = vmatprep.subr.bf16.mxu1 %v2639_v56 }
 0x1b1   :  { %v550_v49 = vadd.f32 %v2803_v16, %v549_v47  ;;  %1863 = vmatprep.mubr.f32.mxu1 %v602_v44  ;;  %1918 = vmatprep.mubr.msk.f32.mxu0 %vm404_vm0, %v1165_v60  ;;  %v2172_v44 = vmov -inf  }
 0x1b2   :  { %1864 = vmatmul.mubr.f32.gmra.mrb[4].mxu1 %v603_v25  ;;  %1919 = vmatmul.mubr.msk.f32.gmra.mrb[30].mxu0 %vm404_vm0, %v1166_v17  ;;  %v605_v51 = vmax.f32 %v555_v45, 0.0  ;;  %32 = vst.msk [vmem:[#allocation2] sm:$0x3] %vm31_vm1, %v2172_v44 }
 0x1b3   :  { %v604_v58 = vmax.f32 %v550_v49, 0.0  ;;  %2083 = vmatpush3.bf16.msra.mxu1 %v2639_v56 }
 0x1b4   :  { %v1815_v35 = vpop.f32.mrb[8].mxu0  ;;  %2076 = vmatprep.subr.bf16.mxu1 %v2652_v62 }
 0x1b5   :  { %v565_v5 = vadd.f32 %v1815_v35, %v2803_v16  ;;  %v559_v52 = vpop.f32.mrb[9].mxu0  ;;  %1866 = vmatprep.mubr.f32.mxu1 %v604_v58 }
 0x1b6   :  { %v560_v63 = vadd.f32 %v2803_v16, %v559_v52  ;;  %1867 = vmatmul.mubr.f32.gmra.mrb[6].mxu1 %v605_v51 }
 0x1b7   :  { %2084 = vmatpush3.bf16.msra.mxu1 %v2652_v62  ;;  %v607_v29 = vmax.f32 %v565_v5, 0.0 }
 0x1b8   :  { %v606_v54 = vmax.f32 %v560_v63, 0.0  ;;  %2077 = vmatprep.subr.bf16.mxu1 %v2667_v4 }
 0x1ba   :  { %1869 = vmatprep.mubr.f32.mxu1 %v606_v54 }
 0x1bb   :  { %1870 = vmatmul.mubr.f32.gmra.mrb[8].mxu1 %v607_v29 }
 0x1bc   :  { %2085 = vmatpush3.bf16.msra.mxu1 %v2667_v4 }
 0x1bd   :  { %2078 = vmatprep.subr.bf16.mxu1 %v2680_v18 }
 0x1c0   :  { %2086 = vmatpush3.bf16.msra.mxu1 %v2680_v18 }
 0x1c1   :  { %2079 = vmatprep.subr.bf16.mxu1 %v2696_v13 }
 0x1c4   :  { %2087 = vmatpush3.bf16.msra.mxu1 %v2696_v13 }
 0x1c5   :  { %2080 = vmatprep.subr.bf16.mxu1 %v2709_v42 }
 0x1c7   :  { %v1818_v56 = vpop.f32.mrb[10].mxu0 }
 0x1c8   :  { %v575_v62 = vadd.f32 %v1818_v56, %v2803_v16  ;;  %v569_v8 = vpop.f32.mrb[11].mxu0  ;;  %2088 = vmatpush3.bf16.msra.mxu1 %v2709_v42  ;;  %v2865_v56 = vld [vmem:[%s2954_s6] ss:$0 sm:$0xff]  ;;  %s2173_s6 = smov [#allocation3]  }
 0x1c9   :  { %v570_v57 = vadd.f32 %v2803_v16, %v569_v8  ;;  %s1611_s19 = sshll.u32 %s2173_s6, 4  ;;  %s1612_s19 = int_to_ptr.vmem [resolvable:$true] %s1611_s19 }
 0x1ca   :  { %v609_v4 = vmax.f32 %v575_v62, 0.0  ;;  %s2145_s1 = scalar_lea.vmem %s1612_s19, 32  ;;  %p2150_p1 = scmp.lt.s32.totalorder %s1612_s19, %s1612_s19 }
 0x1cb   :  { %v608_v59 = vmax.f32 %v570_v57, 0.0  ;;  %p2146_p0 = scmp.ne.s32.totalorder %s1612_s19, %s2145_s1  ;;  %p2151_p2 = scmp.lt.s32.totalorder %s2145_s1, %s2145_s1 }
 0x1cd   :  { %1872 = vmatprep.mubr.f32.mxu1 %v608_v59  ;;  %p2152_p3 = por %p2151_p2, %p2150_p1 }
 0x1ce   :  { %1873 = vmatmul.mubr.f32.gmra.mrb[10].mxu1 %v609_v4 }
 0x1cf   :  { %p2153_p4 = pnand %p2152_p3, %p2146_p0 }
 0x1da   :  { %v1821_v15 = vpop.f32.mrb[12].mxu0 }
 0x1db   :  { %v585_v18 = vadd.f32 %v1821_v15, %v2803_v16  ;;  %v579_v50 = vpop.f32.mrb[13].mxu0 }
 0x1dc   :  { %v580_v13 = vadd.f32 %v2803_v16, %v579_v50 }
 0x1dd   :  { %v611_v23 = vmax.f32 %v585_v18, 0.0 }
 0x1de   :  { %v610_v37 = vmax.f32 %v580_v13, 0.0 }
 0x1e0   :  { %1875 = vmatprep.mubr.f32.mxu1 %v610_v37 }
 0x1e1   :  { %1876 = vmatmul.mubr.f32.gmra.mrb[12].mxu1 %v611_v23 }
 0x1ed   :  { %v1824_v61 = vpop.f32.mrb[14].mxu0 }
 0x1ee   :  { %v595_v19 = vadd.f32 %v1824_v61, %v2803_v16  ;;  %v589_v42 = vpop.f32.mrb[15].mxu0 }
 0x1ef   :  { %v590_v21 = vadd.f32 %v2803_v16, %v589_v42 }
 0x1f0   :  { %v613_v6 = vmax.f32 %v595_v19, 0.0 }
 0x1f1   :  { %v612_v24 = vmax.f32 %v590_v21, 0.0 }
 0x1f3   :  { %1878 = vmatprep.mubr.f32.mxu1 %v612_v24 }
 0x1f4   :  { %1879 = vmatmul.mubr.f32.gmra.mrb[14].mxu1 %v613_v6 }
 0x200   :  { %v1899_v0 = vpop.f32.mrb[16].mxu0 }
 0x201   :  { %v1302_v1 = vadd.f32 %v1899_v0, %v2803_v16  ;;  %v1296_v9 = vpop.f32.mrb[17].mxu0 }
 0x202   :  { %v1297_v55 = vadd.f32 %v2803_v16, %v1296_v9 }
 0x203   :  { %v1376_v12 = vmax.f32 %v1302_v1, 0.0 }
 0x204   :  { %v1375_v7 = vmax.f32 %v1297_v55, 0.0 }
 0x206   :  { %1953 = vmatprep.mubr.f32.mxu0 %v1375_v7 }
 0x207   :  { %1954 = vmatmul.mubr.f32.vlgmr.msra.gmra.mrb[32].mxu0 %v1376_v12 }
 0x213   :  { %v1902_v32 = vpop.f32.mrb[18].mxu0 }
 0x214   :  { %v1312_v3 = vadd.f32 %v1902_v32, %v2803_v16  ;;  %v1306_v22 = vpop.f32.mrb[19].mxu0 }
 0x215   :  { %v1307_v10 = vadd.f32 %v2803_v16, %v1306_v22 }
 0x216   :  { %v1378_v36 = vmax.f32 %v1312_v3, 0.0 }
 0x217   :  { %v1377_v27 = vmax.f32 %v1307_v10, 0.0 }
 0x219   :  { %1956 = vmatprep.mubr.f32.mxu0 %v1377_v27 }
 0x21a   :  { %1957 = vmatmul.mubr.f32.gmra.mrb[34].mxu0 %v1378_v36 }
 0x226   :  { %v1905_v28 = vpop.f32.mrb[20].mxu0 }
 0x227   :  { %v1322_v43 = vadd.f32 %v1905_v28, %v2803_v16  ;;  %v1316_v39 = vpop.f32.mrb[21].mxu0 }
 0x228   :  { %v1317_v14 = vadd.f32 %v2803_v16, %v1316_v39 }
 0x229   :  { %v1380_v2 = vmax.f32 %v1322_v43, 0.0 }
 0x22a   :  { %v1379_v33 = vmax.f32 %v1317_v14, 0.0 }
 0x22c   :  { %1959 = vmatprep.mubr.f32.mxu1 %v1379_v33 }
 0x22d   :  { %1960 = vmatmul.mubr.f32.vlgmr.msra.gmra.mrb[16].mxu1 %v1380_v2 }
 0x239   :  { %v1908_v38 = vpop.f32.mrb[22].mxu0 }
 0x23a   :  { %v1332_v46 = vadd.f32 %v1908_v38, %v2803_v16  ;;  %v1326_v20 = vpop.f32.mrb[23].mxu0 }
 0x23b   :  { %v1327_v40 = vadd.f32 %v2803_v16, %v1326_v20 }
 0x23c   :  { %v1382_v48 = vmax.f32 %v1332_v46, 0.0 }
 0x23d   :  { %v1381_v30 = vmax.f32 %v1327_v40, 0.0 }
 0x23f   :  { %1962 = vmatprep.mubr.f32.mxu1 %v1381_v30 }
 0x240   :  { %1963 = vmatmul.mubr.f32.gmra.mrb[18].mxu1 %v1382_v48 }
 0x24c   :  { %v1911_v41 = vpop.f32.mrb[24].mxu0 }
 0x24d   :  { %v1342_v31 = vadd.f32 %v1911_v41, %v2803_v16  ;;  %v1336_v26 = vpop.f32.mrb[25].mxu0 }
 0x24e   :  { %v1337_v34 = vadd.f32 %v2803_v16, %v1336_v26 }
 0x24f   :  { %v1384_v60 = vmax.f32 %v1342_v31, 0.0 }
 0x250   :  { %v1383_v53 = vmax.f32 %v1337_v34, 0.0 }
 0x252   :  { %1965 = vmatprep.mubr.f32.mxu1 %v1383_v53 }
 0x253   :  { %1966 = vmatmul.mubr.f32.gmra.mrb[20].mxu1 %v1384_v60 }
 0x25f   :  { %v1914_v11 = vpop.f32.mrb[26].mxu0 }
 0x260   :  { %v1352_v17 = vadd.f32 %v1914_v11, %v2803_v16  ;;  %v1346_v25 = vpop.f32.mrb[27].mxu0 }
 0x261   :  { %v1347_v45 = vadd.f32 %v2803_v16, %v1346_v25 }
 0x262   :  { %v1386_v49 = vmax.f32 %v1352_v17, 0.0 }
 0x263   :  { %v1385_v47 = vmax.f32 %v1347_v45, 0.0 }
 0x265   :  { %1968 = vmatprep.mubr.f32.mxu1 %v1385_v47 }
 0x266   :  { %1969 = vmatmul.mubr.f32.gmra.mrb[22].mxu1 %v1386_v49 }
 0x272   :  { %v1917_v58 = vpop.f32.mrb[28].mxu0 }
 0x273   :  { %v1362_v51 = vadd.f32 %v1917_v58, %v2803_v16  ;;  %v1356_v35 = vpop.f32.mrb[29].mxu0 }
 0x274   :  { %v1357_v5 = vadd.f32 %v2803_v16, %v1356_v35 }
 0x275   :  { %v1388_v63 = vmax.f32 %v1362_v51, 0.0 }
 0x276   :  { %v1387_v52 = vmax.f32 %v1357_v5, 0.0 }
 0x278   :  { %1971 = vmatprep.mubr.f32.mxu1 %v1387_v52 }
 0x279   :  { %1972 = vmatmul.mubr.f32.gmra.mrb[24].mxu1 %v1388_v63 }
 0x27d   :  { %v1859_v54 = vpop.f32.mrb[0].mxu1 }
 0x27e   :  { %v703_v29 = vpop.f32.mrb[1].mxu1  ;;  %v709_v57 = vadd.f32 %v1859_v54, %v2865_v56 }
 0x27f   :  { %v704_v59 = vadd.f32 %v2865_v56, %v703_v29 }
 0x280   :  { %v783_v19 = vsel %vm404_vm0, %v709_v57, -inf }
 0x281   :  { %v1862_v62 = vpop.f32.mrb[2].mxu1  ;;  %v782_v42 = vsel %vm404_vm0, %v704_v59, -inf }
 0x282   :  { %v713_v8 = vpop.f32.mrb[3].mxu1  ;;  %v719_v21 = vadd.f32 %v1862_v62, %v2865_v56 }
 0x283   :  { %v714_v6 = vadd.f32 %v2865_v56, %v713_v8 }
 0x284   :  { %v785_v22 = vsel %vm404_vm0, %v719_v21, -inf }
 0x285   :  { %v1865_v4 = vpop.f32.mrb[4].mxu1  ;;  %v1920_v15 = vpop.f32.mrb[30].mxu0  ;;  %v784_v27 = vsel %vm404_vm0, %v714_v6, -inf }
 0x286   :  { %v729_v18 = vadd.f32 %v1865_v4, %v2865_v56  ;;  %v1372_v50 = vadd.f32 %v1920_v15, %v2803_v16  ;;  %v723_v13 = vpop.f32.mrb[5].mxu1  ;;  %v1366_v37 = vpop.f32.mrb[31].mxu0 }
 0x287   :  { %v724_v23 = vadd.f32 %v2865_v56, %v723_v13  ;;  %v1367_v61 = vadd.f32 %v2803_v16, %v1366_v37 }
 0x288   :  { %v788_v24 = vsel %vm404_vm0, %v729_v18, -inf  ;;  %v1390_v7 = vmax.f32 %v1372_v50, 0.0 }
 0x289   :  { %v789_v0 = vmax.f32 %v783_v19, %v788_v24  ;;  %v786_v1 = vsel %vm404_vm0, %v724_v23, -inf  ;;  %v1389_v9 = vmax.f32 %v1367_v61, 0.0  ;;  %v1868_v55 = vpop.f32.mrb[6].mxu1  ;;  %v819_v61 = vld [vmem:[#allocation2] sm:$0x1] }
 0x28a   :  { %v787_v12 = vmax.f32 %v782_v42, %v786_v1  ;;  %v739_v32 = vadd.f32 %v1868_v55, %v2865_v56  ;;  %v733_v16 = vpop.f32.mrb[7].mxu1 }
 0x28b   :  { %v734_v3 = vadd.f32 %v2865_v56, %v733_v16  ;;  %1974 = vmatprep.mubr.f32.mxu1 %v1389_v9 }
 0x28c   :  { %v792_v10 = vsel %vm404_vm0, %v739_v32, -inf  ;;  %1975 = vmatmul.mubr.f32.gmra.mrb[26].mxu1 %v1390_v7 }
 0x28d   :  { %v793_v36 = vmax.f32 %v785_v22, %v792_v10  ;;  %v790_v28 = vsel %vm404_vm0, %v734_v3, -inf }
 0x28e   :  { %v791_v43 = vmax.f32 %v784_v27, %v790_v28  ;;  %v1871_v39 = vpop.f32.mrb[8].mxu1 }
 0x28f   :  { %v749_v14 = vadd.f32 %v1871_v39, %v2865_v56  ;;  %v743_v33 = vpop.f32.mrb[9].mxu1 }
 0x290   :  { %v744_v2 = vadd.f32 %v2865_v56, %v743_v33 }
 0x291   :  { %v796_v38 = vsel %vm404_vm0, %v749_v14, -inf }
 0x292   :  { %v797_v46 = vmax.f32 %v789_v0, %v796_v38  ;;  %v794_v20 = vsel %vm404_vm0, %v744_v2, -inf }
 0x293   :  { %v795_v40 = vmax.f32 %v787_v12, %v794_v20 }
 0x2a1   :  { %v1874_v30 = vpop.f32.mrb[10].mxu1 }
 0x2a2   :  { %v759_v48 = vadd.f32 %v1874_v30, %v2865_v56  ;;  %v753_v41 = vpop.f32.mrb[11].mxu1 }
 0x2a3   :  { %v754_v31 = vadd.f32 %v2865_v56, %v753_v41 }
 0x2a4   :  { %v800_v26 = vsel %vm404_vm0, %v759_v48, -inf }
 0x2a5   :  { %v801_v34 = vmax.f32 %v793_v36, %v800_v26  ;;  %v798_v53 = vsel %vm404_vm0, %v754_v31, -inf }
 0x2a6   :  { %v799_v60 = vmax.f32 %v791_v43, %v798_v53 }
 0x2b4   :  { %v1877_v44 = vpop.f32.mrb[12].mxu1 }
 0x2b5   :  { %v769_v11 = vadd.f32 %v1877_v44, %v2865_v56  ;;  %v763_v17 = vpop.f32.mrb[13].mxu1 }
 0x2b6   :  { %v764_v25 = vadd.f32 %v2865_v56, %v763_v17 }
 0x2b7   :  { %v804_v45 = vsel %vm404_vm0, %v769_v11, -inf }
 0x2b8   :  { %v805_v47 = vmax.f32 %v797_v46, %v804_v45  ;;  %v802_v49 = vsel %vm404_vm0, %v764_v25, -inf }
 0x2b9   :  { %v803_v58 = vmax.f32 %v795_v40, %v802_v49 }
 0x2bb   :  { %v810_v51 = vmax.f32 %v803_v58, %v805_v47 }
 0x2c7   :  { %v1880_v35 = vpop.f32.mrb[14].mxu1 }
 0x2c8   :  { %v779_v5 = vadd.f32 %v1880_v35, %v2865_v56  ;;  %v773_v52 = vpop.f32.mrb[15].mxu1 }
 0x2c9   :  { %v774_v63 = vadd.f32 %v2865_v56, %v773_v52 }
 0x2ca   :  { %v808_v54 = vsel %vm404_vm0, %v779_v5, -inf }
 0x2cb   :  { %v809_v29 = vmax.f32 %v801_v34, %v808_v54  ;;  %v806_v62 = vsel %vm404_vm0, %v774_v63, -inf }
 0x2cc   :  { %v807_v8 = vmax.f32 %v799_v60, %v806_v62 }
 0x2ce   :  { %v811_v57 = vmax.f32 %v807_v8, %v809_v29 }
 0x2d0   :  { %v812_v59 = vmax.f32 %v810_v51, %v811_v57 }
 0x2d2   :  { %v813_v4 = vrot.slane %v812_v59, 4 }
 0x2d4   :  { %v814_v15 = vmax.f32 %v812_v59, %v813_v4 }
 0x2d6   :  { %v815_v18 = vrot.slane %v814_v15, 2 }
 0x2d8   :  { %v816_v50 = vmax.f32 %v814_v15, %v815_v18 }
 0x2da   :  { %v817_v13 = vrot.slane %v816_v50, 1  ;;  %v1955_v37 = vpop.f32.mrb[32].mxu0 }
 0x2db   :  { %v1480_v23 = vpop.f32.mrb[33].mxu0  ;;  %v1486_v6 = vadd.f32 %v1955_v37, %v2865_v56 }
 0x2dc   :  { %v818_v19 = vmax.f32 %v816_v50, %v817_v13  ;;  %v1481_v0 = vadd.f32 %v2865_v56, %v1480_v23 }
 0x2dd   :  { %v1560_v12 = vsel %vm404_vm0, %v1486_v6, -inf }
 0x2de   :  { %v820_v42 = vmax.f32 %v819_v61, %v818_v19  ;;  %v1559_v16 = vsel %vm404_vm0, %v1481_v0, -inf  ;;  %v1596_v0 = vld [vmem:[#allocation2 + $0x1] sm:$0x1] }
 0x2e0   :  { %822 = vst.msk [vmem:[#allocation2] sm:$0x1] %vm821_vm2, %v820_v42 }
 0x2ed   :  { %v1958_v21 = vpop.f32.mrb[34].mxu0 }
 0x2ee   :  { %v1490_v24 = vpop.f32.mrb[35].mxu0  ;;  %v1496_v27 = vadd.f32 %v1958_v21, %v2865_v56 }
 0x2ef   :  { %v1491_v36 = vadd.f32 %v2865_v56, %v1490_v24 }
 0x2f0   :  { %v1562_v33 = vsel %vm404_vm0, %v1496_v27, -inf }
 0x2f1   :  { %v1561_v38 = vsel %vm404_vm0, %v1491_v36, -inf }
 0x300   :  { %v1961_v1 = vpop.f32.mrb[16].mxu1 }
 0x301   :  { %v1506_v9 = vadd.f32 %v1961_v1, %v2865_v56  ;;  %v1500_v55 = vpop.f32.mrb[17].mxu1 }
 0x302   :  { %v1501_v7 = vadd.f32 %v2865_v56, %v1500_v55 }
 0x303   :  { %v1565_v32 = vsel %vm404_vm0, %v1506_v9, -inf }
 0x304   :  { %v1566_v3 = vmax.f32 %v1560_v12, %v1565_v32  ;;  %v1563_v22 = vsel %vm404_vm0, %v1501_v7, -inf }
 0x305   :  { %v1564_v10 = vmax.f32 %v1559_v16, %v1563_v22 }
 0x313   :  { %v1964_v28 = vpop.f32.mrb[18].mxu1 }
 0x314   :  { %v1516_v43 = vadd.f32 %v1964_v28, %v2865_v56  ;;  %v1510_v39 = vpop.f32.mrb[19].mxu1 }
 0x315   :  { %v1511_v14 = vadd.f32 %v2865_v56, %v1510_v39 }
 0x316   :  { %v1569_v2 = vsel %vm404_vm0, %v1516_v43, -inf }
 0x317   :  { %v1570_v46 = vmax.f32 %v1562_v33, %v1569_v2  ;;  %v1567_v20 = vsel %vm404_vm0, %v1511_v14, -inf }
 0x318   :  { %v1568_v40 = vmax.f32 %v1561_v38, %v1567_v20 }
 0x326   :  { %v1967_v30 = vpop.f32.mrb[20].mxu1 }
 0x327   :  { %v1526_v48 = vadd.f32 %v1967_v30, %v2865_v56  ;;  %v1520_v41 = vpop.f32.mrb[21].mxu1 }
 0x328   :  { %v1521_v31 = vadd.f32 %v2865_v56, %v1520_v41 }
 0x329   :  { %v1573_v26 = vsel %vm404_vm0, %v1526_v48, -inf }
 0x32a   :  { %v1574_v34 = vmax.f32 %v1566_v3, %v1573_v26  ;;  %v1571_v53 = vsel %vm404_vm0, %v1521_v31, -inf }
 0x32b   :  { %v1572_v60 = vmax.f32 %v1564_v10, %v1571_v53 }
 0x339   :  { %v1970_v44 = vpop.f32.mrb[22].mxu1 }
 0x33a   :  { %v1536_v11 = vadd.f32 %v1970_v44, %v2865_v56  ;;  %v1530_v17 = vpop.f32.mrb[23].mxu1 }
 0x33b   :  { %v1531_v25 = vadd.f32 %v2865_v56, %v1530_v17 }
 0x33c   :  { %v1577_v45 = vsel %vm404_vm0, %v1536_v11, -inf }
 0x33d   :  { %v1578_v47 = vmax.f32 %v1570_v46, %v1577_v45  ;;  %v1575_v49 = vsel %vm404_vm0, %v1531_v25, -inf }
 0x33e   :  { %v1576_v58 = vmax.f32 %v1568_v40, %v1575_v49 }
 0x34c   :  { %v1973_v51 = vpop.f32.mrb[24].mxu1 }
 0x34d   :  { %v1546_v35 = vadd.f32 %v1973_v51, %v2865_v56  ;;  %v1540_v5 = vpop.f32.mrb[25].mxu1 }
 0x34e   :  { %v1541_v52 = vadd.f32 %v2865_v56, %v1540_v5 }
 0x34f   :  { %v1581_v63 = vsel %vm404_vm0, %v1546_v35, -inf }
 0x350   :  { %v1582_v54 = vmax.f32 %v1574_v34, %v1581_v63  ;;  %v1579_v29 = vsel %vm404_vm0, %v1541_v52, -inf }
 0x351   :  { %v1580_v62 = vmax.f32 %v1572_v60, %v1579_v29 }
 0x353   :  { %v1587_v8 = vmax.f32 %v1580_v62, %v1582_v54 }
 0x35f   :  { %v1976_v57 = vpop.f32.mrb[26].mxu1 }
 0x360   :  { %v1556_v59 = vadd.f32 %v1976_v57, %v2865_v56  ;;  %v1550_v4 = vpop.f32.mrb[27].mxu1 }
 0x361   :  { %v1551_v15 = vadd.f32 %v2865_v56, %v1550_v4 }
 0x362   :  { %v1585_v18 = vsel %vm404_vm0, %v1556_v59, -inf }
 0x363   :  { %v1586_v50 = vmax.f32 %v1578_v47, %v1585_v18  ;;  %v1583_v13 = vsel %vm404_vm0, %v1551_v15, -inf }
 0x364   :  { %v1584_v37 = vmax.f32 %v1576_v58, %v1583_v13 }
 0x366   :  { %v1588_v23 = vmax.f32 %v1584_v37, %v1586_v50 }
 0x368   :  { %v1589_v61 = vmax.f32 %v1587_v8, %v1588_v23 }
 0x36a   :  { %v1590_v19 = vrot.slane %v1589_v61, 4 }
 0x36c   :  { %v1591_v42 = vmax.f32 %v1589_v61, %v1590_v19 }
 0x36e   :  { %v1592_v21 = vrot.slane %v1591_v42, 2 }
 0x370   :  { %v1593_v24 = vmax.f32 %v1591_v42, %v1592_v21 }
 0x372   :  { %v1594_v6 = vrot.slane %v1593_v24, 1 }
 0x374   :  { %v1595_v1 = vmax.f32 %v1593_v24, %v1594_v6 }
 0x376   :  { %v1597_v9 = vmax.f32 %v1596_v0, %v1595_v1 }
 0x378   :  { %1598 = vst.msk [vmem:[#allocation2 + $0x1] sm:$0x1] %vm821_vm2, %v1597_v9 }
 0x37f   :  { %v1602_v56 = vld [vmem:[#allocation2] sm:$0x3] }
 0x380   :  { %1604 = vst.msk [vmem:[#allocation3] sm:$0x3] %vm31_vm1, %v1602_v56 }
 0x381   :  { %2156 = shalt.err (!%p2153_p4)
}
 0x382   :  { %s2157_s22 = scalar_lea.hbm %s2955_s7, 32 }
 0x383   :  { %p2158_p5 = scmp.ne.s32.totalorder %s2955_s7, %s2157_s22  ;;  %p2161_p6 = scmp.lt.u32.totalorder %s2157_s22, %s2955_s7 }
 0x385   :  { %p2163_p7 = pnand %p2161_p6, %p2158_p5 }
 0x387   :  { %2166 = shalt.err (!%p2163_p7)
}
 0x388   :  { %1614 = dma.vmem_to_hbm [thread:$0]  %s1612_s19, 32, %s2955_s7, [#allocation4]  }
 0x389   :  { %2167 = dma.done.wait [#allocation4], 32  }
 0x38a   :  { %2168 = vsyncadd [#allocation4], 4294967264 }
 0x38b   :  { %1618 = vsyncpa [#allocation4], 1 }

</bundles_post_ra>
